<compile_context>
chip_gen: v6e
topology: v6e:2x2x1
jax: 0.10.0
libtpu: 0.0.40
codegen_flags: <defaults>
</compile_context>

<pallas_src>
import math

import jax
import jax.numpy as jnp
from jax import lax
from jax.experimental import pallas as pl
from jax.experimental.pallas import tpu as pltpu

_LN_EPS = 1e-5  # nn.LayerNorm default
_MIB = 1024 * 1024


def _patch_expand_kernel(xt_ref, wup_ref, bup_ref, g_ref, b_ref, wlt_ref, bl_ref,
                         o_ref, acc_ref):
    """Fused up_linear + LayerNorm + linear for one (n-tile, batch, k-chunk) grid point.

    xt_ref  : (TK, C)      K-chunk of x^T for this batch element (bf16)
    wup_ref : (TN, TK)     (row-tile, K-chunk) of up_linear weight (bf16)
    bup_ref : (TN, 1)      matching slice of up_linear bias (f32)
    g_ref   : (1, C)       LayerNorm gamma (f32)
    b_ref   : (1, C)       LayerNorm beta (f32)
    wlt_ref : (C, out_C)   final linear weight, pre-transposed (f32)
    bl_ref  : (1, out_C)   final linear bias (f32)
    o_ref   : (TN, out_C)  output tile
    acc_ref : (TN, C)      f32 accumulator scratch, persistent across the K axis
    """
    k = pl.program_id(2)

    @pl.when(k == 0)
    def _():
        acc_ref[...] = jnp.zeros_like(acc_ref)

    # up_linear, emitted directly in the post-permute (N_out, C) orientation:
    #   z[n, c] = sum_k W_up[n, k] * x[c, k]     (bias added in the finalize phase)
    acc_ref[...] += jnp.dot(wup_ref[...], xt_ref[...],
                            preferred_element_type=jnp.float32)

    @pl.when(k == pl.num_programs(2) - 1)
    def _():
        z = acc_ref[...] + bup_ref[...]                     # (TN, C), f32

        # LayerNorm over the channel (lane) axis, f32 math.
        mean = jnp.mean(z, axis=-1, keepdims=True)
        zc = z - mean
        var = jnp.mean(zc * zc, axis=-1, keepdims=True)
        zn = zc * lax.rsqrt(var + _LN_EPS)                  # rsqrt -> EUP slot
        zn = zn * g_ref[...] + b_ref[...]                   # (TN, C)

        # Final linear C -> out_C (small; kept in f32).
        out = jnp.dot(zn.astype(wlt_ref.dtype), wlt_ref[...],
                      preferred_element_type=jnp.float32)
        o_ref[...] = (out + bl_ref[...]).astype(o_ref.dtype)


def _vmem_capacity_bytes():
    """Per-core VMEM capacity; conservative fallback (v7x) if the query fails."""
    try:
        return int(pltpu.get_tpu_info().vmem_capacity_bytes)
    except Exception:
        return 64 * _MIB


def _tile_candidates(n, align):
    """Divisors of n that are multiples of `align`, plus n itself (full extent), descending."""
    cands = {n}
    for d in range(align, n, align):
        if n % d == 0:
            cands.add(d)
    return sorted(cands, reverse=True)


def _pad_lane(v):
    return ((v + 127) // 128) * 128


def _step_vmem_bytes(tn, tk, c, out_c, stream_bytes, out_bytes):
    """Per-step VMEM footprint estimate (Pallas double-buffers every operand; lane-padded)."""
    dbl = 2
    c_p, oc_p, tk_p = _pad_lane(c), _pad_lane(out_c), _pad_lane(tk)
    return (dbl * tn * tk_p * stream_bytes                   # W_up tile
            + dbl * tk * c_p * stream_bytes                  # x^T K-chunk
            + dbl * tn * 128 * 4                             # b_up tile (lane-padded)
            + dbl * (2 * 8 * c_p + c * oc_p + 8 * oc_p) * 4  # gamma / beta / W_lin^T / b_lin
            + dbl * tn * oc_p * out_bytes                    # output tile
            + tn * c_p * 4)                                  # accumulator scratch


def _pick_tiles(n_out, n_in, c, out_c, batch, stream_bytes, out_bytes, budget,
                max_tile_n=None, max_tile_k=None):
    """Pick (tn, tk): aligned divisors of (n_out, n_in) under a VMEM budget.

    Preference: decent MXU row fill (tn up to 128), then no K split (largest tk, which
    keeps W_up HBM traffic at 1x), then the largest tn (fewer steps / x^T re-reads).
    """
    tn_cands = _tile_candidates(n_out, 8)      # sublane-aligned (or the full extent)
    tk_cands = _tile_candidates(n_in, 128)     # lane-aligned (or the full extent)
    cap_n = max_tile_n if max_tile_n is not None else 1024
    tn_cands = [t for t in tn_cands if t <= cap_n] or [min(tn_cands)]
    if max_tile_k is not None:
        tk_cands = [t for t in tk_cands if t <= max_tile_k] or [min(tk_cands)]

    best = None
    for tn in tn_cands:
        for tk in tk_cands:
            if _step_vmem_bytes(tn, tk, c, out_c, stream_bytes, out_bytes) > budget:
                continue
            score = (min(tn, 128), tk, tn)
            if best is None or score > best[0]:
                best = (score, tn, tk)
    if best is None:                            # nothing fits: smallest legal tiles
        tn, tk = min(tn_cands), min(tk_cands)
    else:
        _, tn, tk = best

    # v7x has two TensorCores sharing the "parallel" grid axes: if the grid would be
    # tiny, trade some tile height for a few pipelined steps per core (never below 64 rows).
    if (n_out // tn) * batch < 4:
        for cand in tn_cands:                   # descending
            if cand <= tn and cand >= 64 and (n_out // cand) * batch >= 4:
                tn = cand
                break
    return tn, tk


def patch_expand(x, w_up, b_up, gamma, beta, w_lin, b_lin, *,
                 compute_dtype=jnp.bfloat16, max_tile_n=None, max_tile_k=None):
    """Pallas TPU implementation of PatchExpand.forward.

    x     : (B, D, D, D, C)
    w_up  : (N_out, N_in) = ((D*scale)^3, D^3),  b_up: (N_out,)
    gamma, beta : (C,)   (LayerNorm over in_channels)
    w_lin : (out_C, C),  b_lin: (out_C,)
    compute_dtype: dtype for the streamed matmul operands (W_up, x^T). Accumulation,
                   LayerNorm and the final projection stay in f32.
    returns (B, D*scale, D*scale, D*scale, out_C)
    """
    B, D0, D1, D2, C = x.shape
    n_in = D0 * D1 * D2
    n_out, n_in_w = w_up.shape
    out_c = w_lin.shape[0]
    assert n_in_w == n_in and w_lin.shape[1] == C
    # Reference computes D_new = ceil(n_out ** (1/3)); n_out is (in_dimension*scale)^3,
    # i.e. always a perfect cube -- assert that invariant so round() is equivalent.
    d_new = int(round(n_out ** (1.0 / 3.0)))
    assert d_new ** 3 == n_out, "up_linear output features must be a perfect cube"

    if compute_dtype is None:
        compute_dtype = x.dtype

    # x.contiguous().view(B, C, -1) is a pure row-major reshape (no transpose) --
    # replicated exactly, channel/spatial mixing and all.
    x2 = x.reshape(B, C, n_in)
    # Layout plumbing once in the wrapper so the kernel only issues plain (m,k)x(k,n) dots.
    x2t = jnp.swapaxes(x2, 1, 2).astype(compute_dtype)        # (B, N_in, C)
    w_up_c = w_up.astype(compute_dtype)                        # (N_out, N_in)
    w_lin_t = jnp.swapaxes(w_lin, 0, 1).astype(jnp.float32)    # (C, out_C)
    b_up2 = b_up.reshape(n_out, 1).astype(jnp.float32)
    gamma2 = gamma.reshape(1, C).astype(jnp.float32)
    beta2 = beta.reshape(1, C).astype(jnp.float32)
    b_lin2 = b_lin.reshape(1, out_c).astype(jnp.float32)

    stream_bytes = jnp.dtype(compute_dtype).itemsize
    out_bytes = jnp.dtype(x.dtype).itemsize

    vmem_cap = _vmem_capacity_bytes()
    budget = int(0.70 * vmem_cap)
    vmem_limit = max(32 * _MIB, min(int(0.85 * vmem_cap), 128 * _MIB))

    tn, tk = _pick_tiles(n_out, n_in, C, out_c, B, stream_bytes, out_bytes, budget,
                         max_tile_n=max_tile_n, max_tile_k=max_tile_k)
    n_tiles = n_out // tn
    k_tiles = n_in // tk

    # Grid order (n, b, k):
    #   * k (reduction) innermost, "arbitrary": standard accumulator pattern.
    #   * b inside n: the W_up row tile's block index is constant across the batch loop,
    #     so the dominant HBM stream is fetched once (not B times) whenever k_tiles == 1;
    #     the much smaller x^T is re-fetched per step instead.
    grid = (n_tiles, B, k_tiles)

    flops = 2 * B * n_out * n_in * C + 2 * B * n_out * C * out_c + 8 * B * n_out * C
    wup_reads = 1 if k_tiles == 1 else B   # W_up only re-streams per batch if K is split
    bytes_accessed = (
        stream_bytes * w_up.size * wup_reads
        + stream_bytes * B * n_in * C * n_tiles        # x^T re-fetched once per n-tile
        + out_bytes * B * n_out * out_c                # output written once
        + 4 * (n_out + 2 * C + C * out_c + out_c))     # small params
    cost = pl.CostEstimate(flops=int(flops), transcendentals=int(B * n_out),
                           bytes_accessed=int(bytes_accessed))

    out2 = pl.pallas_call(
        _patch_expand_kernel,
        out_shape=jax.ShapeDtypeStruct((B, n_out, out_c), x.dtype),
        grid=grid,
        in_specs=[
            pl.BlockSpec((None, tk, C), lambda n, b, k: (b, k, 0)),   # x^T K-chunk (batch squeezed)
            pl.BlockSpec((tn, tk), lambda n, b, k: (n, k)),           # W_up (row-tile, K-chunk)
            pl.BlockSpec((tn, 1), lambda n, b, k: (n, 0)),            # b_up tile
            pl.BlockSpec((1, C), lambda n, b, k: (0, 0)),             # gamma
            pl.BlockSpec((1, C), lambda n, b, k: (0, 0)),             # beta
            pl.BlockSpec((C, out_c), lambda n, b, k: (0, 0)),         # W_lin^T
            pl.BlockSpec((1, out_c), lambda n, b, k: (0, 0)),         # b_lin
        ],
        out_specs=pl.BlockSpec((None, tn, out_c), lambda n, b, k: (b, n, 0)),
        scratch_shapes=[pltpu.VMEM((tn, C), jnp.float32)],
        compiler_params=pltpu.CompilerParams(
            dimension_semantics=("parallel", "parallel", "arbitrary"),
            vmem_limit_bytes=vmem_limit),
        cost_estimate=cost,
    )(x2t, w_up_c, b_up2, gamma2, beta2, w_lin_t, b_lin2)

    return out2.reshape(B, d_new, d_new, d_new, out_c)


def patch_expand_reference(x, w_up, b_up, gamma, beta, w_lin, b_lin):
    """Pure-JAX mirror of the PyTorch forward, for correctness checking."""
    B = x.shape[0]
    C = x.shape[-1]
    x2 = x.reshape(B, C, -1)
    y = jnp.einsum('bcn,mn->bcm', x2, w_up, precision=lax.Precision.HIGHEST) + b_up
    n_out = y.shape[2]
    d_new = math.ceil(n_out ** (1.0 / 3.0))
    z = jnp.transpose(y, (0, 2, 1))
    mean = z.mean(-1, keepdims=True)
    var = ((z - mean) ** 2).mean(-1, keepdims=True)
    zn = (z - mean) / jnp.sqrt(var + _LN_EPS) * gamma + beta
    out = jnp.einsum('bnc,oc->bno', zn, w_lin, precision=lax.Precision.HIGHEST) + b_lin
    return out.reshape(B, d_new, d_new, d_new, -1)


def _make_inputs(key, B, D, C, scale, out_C):
    n_in = D ** 3
    n_out = (D * scale) ** 3
    ks = jax.random.split(key, 7)
    x = jax.random.normal(ks[0], (B, D, D, D, C), dtype=jnp.float32)
    w_up = jax.random.normal(ks[1], (n_out, n_in), dtype=jnp.float32) / math.sqrt(n_in)
    b_up = 0.1 * jax.random.normal(ks[2], (n_out,), dtype=jnp.float32)
    gamma = 1.0 + 0.1 * jax.random.normal(ks[3], (C,), dtype=jnp.float32)
    beta = 0.1 * jax.random.normal(ks[4], (C,), dtype=jnp.float32)
    w_lin = jax.random.normal(ks[5], (out_C, C), dtype=jnp.float32) / math.sqrt(C)
    b_lin = 0.1 * jax.random.normal(ks[6], (out_C,), dtype=jnp.float32)
    return x, w_up, b_up, gamma, beta, w_lin, b_lin


def _check(out, x, w_up, b_up, gamma, beta, w_lin, b_lin, B, D, scale, out_C):
    assert out.shape == (B, D * scale, D * scale, D * scale, out_C), out.shape
    assert out.dtype == x.dtype
    # Primary check: reference computed with the same bf16-rounded streamed operands
    # (the only intentional numerical difference introduced by the kernel).
    xr = x.astype(jnp.bfloat16).astype(jnp.float32)
    wr = w_up.astype(jnp.bfloat16).astype(jnp.float32)
    ref = patch_expand_reference(xr, wr, b_up, gamma, beta, w_lin, b_lin)
    err = float(jnp.max(jnp.abs(out - ref)))
    assert jnp.allclose(out, ref, rtol=2e-3, atol=2e-3), f"bf16-consistent max err {err}"
    # Loose sanity check against the full-f32 reference (bounds the bf16 rounding impact).
    ref32 = patch_expand_reference(x, w_up, b_up, gamma, beta, w_lin, b_lin)
    err32 = float(jnp.max(jnp.abs(out - ref32)))
    assert err32 < 5e-2, f"f32 max err {err32}"


if __name__ == "__main__":
    key = jax.random.PRNGKey(0)
    k1, k2 = jax.random.split(key)

    # Config 1: small shapes (B=2, D=4, C=16, scale=2, out_C=8); k_tiles == 1 path,
    # where the W_up stream is fetched exactly once from HBM.
    B, D, C, scale, out_C = 2, 4, 16, 2, 8
    args1 = _make_inputs(k1, B, D, C, scale, out_C)
    out1 = jax.block_until_ready(patch_expand(*args1))
    _check(out1, *args1, B, D, scale, out_C)

    # Config 2: larger contraction (n_in=512), forcing the K-tiled accumulator path
    # (tk=128 -> 4 reduction steps per output tile) to exercise init/accumulate/finalize.
    B2, D2, C2, scale2, out_C2 = 1, 8, 16, 2, 8
    args2 = _make_inputs(k2, B2, D2, C2, scale2, out_C2)
    out2 = jax.block_until_ready(patch_expand(*args2, max_tile_k=128))
    _check(out2, *args2, B2, D2, scale2, out_C2)

    print("KERNEL_OK")
</pallas_src>

<mosaic_0001>
module attributes {stable_mosaic.version = 11 : i64} {
  func.func @_patch_expand_kernel(%arg0: i32, %arg1: i32, %arg2: i32, %arg3: memref<1x64x16xbf16, #tpu.memory_space<vmem>>, %arg4: memref<256x64xbf16, #tpu.memory_space<vmem>>, %arg5: memref<256x1xf32, #tpu.memory_space<vmem>>, %arg6: memref<1x16xf32, #tpu.memory_space<vmem>>, %arg7: memref<1x16xf32, #tpu.memory_space<vmem>>, %arg8: memref<16x8xf32, #tpu.memory_space<vmem>>, %arg9: memref<1x8xf32, #tpu.memory_space<vmem>>, %arg10: memref<1x256x8xf32, #tpu.memory_space<vmem>>, %arg11: memref<256x16xf32, #tpu.memory_space<vmem>>) attributes {dimension_semantics = [#tpu.dimension_semantics<parallel>, #tpu.dimension_semantics<parallel>, #tpu.dimension_semantics<arbitrary>], iteration_bounds = array<i64: 2, 2, 1>, scalar_prefetch = 0 : i64, scratch_operands = 1 : i64, tpu.core_type = #tpu.core_type<tc>, window_params = [{transform_indices = @transform_0, window_bounds = array<i64: 1, 64, 16>}, {transform_indices = @transform_1, window_bounds = array<i64: 256, 64>}, {transform_indices = @transform_2, window_bounds = array<i64: 256, 1>}, {pipeline_mode = #tpu.pipeline_mode<synchronous>, transform_indices = @transform_3, window_bounds = array<i64: 1, 16>}, {pipeline_mode = #tpu.pipeline_mode<synchronous>, transform_indices = @transform_4, window_bounds = array<i64: 1, 16>}, {pipeline_mode = #tpu.pipeline_mode<synchronous>, transform_indices = @transform_5, window_bounds = array<i64: 16, 8>}, {pipeline_mode = #tpu.pipeline_mode<synchronous>, transform_indices = @transform_6, window_bounds = array<i64: 1, 8>}, {transform_indices = @transform_7, window_bounds = array<i64: 1, 256, 8>}]} {
    %c0_i32 = arith.constant 0 : i32
    %0 = arith.cmpi eq, %arg2, %c0_i32 : i32
    %1 = arith.extui %0 : i1 to i32
    %c0_i32_0 = arith.constant 0 : i32
    %2 = arith.cmpi ne, %1, %c0_i32_0 : i32
    scf.if %2 {
      %cst_11 = arith.constant 0.000000e+00 : f32
      %13 = vector.broadcast %cst_11 : f32 to vector<256x16xf32>
      %c0_12 = arith.constant 0 : index
      %c0_13 = arith.constant 0 : index
      %14 = vector.load %arg11[%c0_12, %c0_13] : memref<256x16xf32, #tpu.memory_space<vmem>>, vector<256x16xf32>
      tpu.vector_store %arg11[%c0_12, %c0_13], %13 {strides = array<i32>} : memref<256x16xf32, #tpu.memory_space<vmem>>, vector<256x16xf32>,
    } else {
    }
    %c0 = arith.constant 0 : index
    %c0_1 = arith.constant 0 : index
    %3 = vector.load %arg11[%c0, %c0_1] : memref<256x16xf32, #tpu.memory_space<vmem>>, vector<256x16xf32>
    %c0_2 = arith.constant 0 : index
    %c0_3 = arith.constant 0 : index
    %4 = vector.load %arg4[%c0_2, %c0_3] : memref<256x64xbf16, #tpu.memory_space<vmem>>, vector<256x64xbf16>
    %c0_4 = arith.constant 0 : index
    %c0_5 = arith.constant 0 : index
    %c0_6 = arith.constant 0 : index
    %5 = vector.load %arg3[%c0_4, %c0_5, %c0_6] : memref<1x64x16xbf16, #tpu.memory_space<vmem>>, vector<1x64x16xbf16>
    %6 = vector.shape_cast %5 : vector<1x64x16xbf16> to vector<64x16xbf16>
    %cst = arith.constant dense<0.000000e+00> : vector<256x16xf32>
    %7 = tpu.matmul %4, %6, %cst {dimension_numbers = #tpu.dot_dimension_numbers<[1], [0], [0], [1], [0, 0, 1, 1], [], []>} : vector<256x64xbf16>, vector<64x16xbf16>, vector<256x16xf32> -> vector<256x16xf32>
    %8 = arith.addf %3, %7 : vector<256x16xf32>
    %c0_7 = arith.constant 0 : index
    %c0_8 = arith.constant 0 : index
    %9 = vector.load %arg11[%c0_7, %c0_8] : memref<256x16xf32, #tpu.memory_space<vmem>>, vector<256x16xf32>
    tpu.vector_store %arg11[%c0_7, %c0_8], %8 {strides = array<i32>} : memref<256x16xf32, #tpu.memory_space<vmem>>, vector<256x16xf32>,
    %c0_i32_9 = arith.constant 0 : i32
    %10 = arith.cmpi eq, %arg2, %c0_i32_9 : i32
    %11 = arith.extui %10 : i1 to i32
    %c0_i32_10 = arith.constant 0 : i32
    %12 = arith.cmpi ne, %11, %c0_i32_10 : i32
    scf.if %12 {
      %c0_11 = arith.constant 0 : index
      %c0_12 = arith.constant 0 : index
      %13 = vector.load %arg11[%c0_11, %c0_12] : memref<256x16xf32, #tpu.memory_space<vmem>>, vector<256x16xf32>
      %c0_13 = arith.constant 0 : index
      %c0_14 = arith.constant 0 : index
      %14 = vector.load %arg5[%c0_13, %c0_14] : memref<256x1xf32, #tpu.memory_space<vmem>>, vector<256x1xf32>
      %15 = vector.broadcast %14 : vector<256x1xf32> to vector<256x16xf32>
      %16 = arith.addf %13, %15 : vector<256x16xf32>
      %cst_15 = arith.constant dense<0.000000e+00> : vector<256xf32>
      %17 = vector.multi_reduction <add>, %16, %cst_15 [1] : vector<256x16xf32> to vector<256xf32>
      %18 = vector.shape_cast %17 : vector<256xf32> to vector<256x1xf32>
      %cst_16 = arith.constant 1.600000e+01 : f32
      %19 = vector.broadcast %cst_16 : f32 to vector<256x1xf32>
      %20 = arith.divf %18, %19 : vector<256x1xf32>
      %21 = vector.broadcast %20 : vector<256x1xf32> to vector<256x16xf32>
      %22 = arith.subf %16, %21 : vector<256x16xf32>
      %23 = arith.mulf %22, %22 : vector<256x16xf32>
      %cst_17 = arith.constant dense<0.000000e+00> : vector<256xf32>
      %24 = vector.multi_reduction <add>, %23, %cst_17 [1] : vector<256x16xf32> to vector<256xf32>
      %25 = vector.shape_cast %24 : vector<256xf32> to vector<256x1xf32>
      %cst_18 = arith.constant 1.600000e+01 : f32
      %26 = vector.broadcast %cst_18 : f32 to vector<256x1xf32>
      %27 = arith.divf %25, %26 : vector<256x1xf32>
      %cst_19 = arith.constant 9.99999974E-6 : f32
      %28 = vector.broadcast %cst_19 : f32 to vector<256x1xf32>
      %29 = arith.addf %27, %28 : vector<256x1xf32>
      %30 = math.rsqrt %29 : vector<256x1xf32>
      %31 = vector.broadcast %30 : vector<256x1xf32> to vector<256x16xf32>
      %32 = arith.mulf %22, %31 : vector<256x16xf32>
      %c0_20 = arith.constant 0 : index
      %c0_21 = arith.constant 0 : index
      %33 = vector.load %arg6[%c0_20, %c0_21] : memref<1x16xf32, #tpu.memory_space<vmem>>, vector<1x16xf32>
      %34 = vector.broadcast %33 : vector<1x16xf32> to vector<256x16xf32>
      %35 = arith.mulf %32, %34 : vector<256x16xf32>
      %c0_22 = arith.constant 0 : index
      %c0_23 = arith.constant 0 : index
      %36 = vector.load %arg7[%c0_22, %c0_23] : memref<1x16xf32, #tpu.memory_space<vmem>>, vector<1x16xf32>
      %37 = vector.broadcast %36 : vector<1x16xf32> to vector<256x16xf32>
      %38 = arith.addf %35, %37 : vector<256x16xf32>
      %c0_24 = arith.constant 0 : index
      %c0_25 = arith.constant 0 : index
      %39 = vector.load %arg8[%c0_24, %c0_25] : memref<16x8xf32, #tpu.memory_space<vmem>>, vector<16x8xf32>
      %cst_26 = arith.constant dense<0.000000e+00> : vector<256x8xf32>
      %40 = tpu.matmul %38, %39, %cst_26 {dimension_numbers = #tpu.dot_dimension_numbers<[1], [0], [0], [1], [0, 0, 1, 1], [], []>} : vector<256x16xf32>, vector<16x8xf32>, vector<256x8xf32> -> vector<256x8xf32>
      %c0_27 = arith.constant 0 : index
      %c0_28 = arith.constant 0 : index
      %41 = vector.load %arg9[%c0_27, %c0_28] : memref<1x8xf32, #tpu.memory_space<vmem>>, vector<1x8xf32>
      %42 = vector.broadcast %41 : vector<1x8xf32> to vector<256x8xf32>
      %43 = arith.addf %40, %42 : vector<256x8xf32>
      %c0_29 = arith.constant 0 : index
      %c0_30 = arith.constant 0 : index
      %c0_31 = arith.constant 0 : index
      %44 = vector.load %arg10[%c0_29, %c0_30, %c0_31] : memref<1x256x8xf32, #tpu.memory_space<vmem>>, vector<1x256x8xf32>
      %45 = vector.shape_cast %44 : vector<1x256x8xf32> to vector<256x8xf32>
      %46 = vector.shape_cast %43 : vector<256x8xf32> to vector<1x256x8xf32>
      tpu.vector_store %arg10[%c0_29, %c0_30, %c0_31], %46 {strides = array<i32>} : memref<1x256x8xf32, #tpu.memory_space<vmem>>, vector<1x256x8xf32>,
    } else {
    }
    return
  }
  func.func @transform_0(%arg0: i32, %arg1: i32, %arg2: i32) -> (i32, i32, i32) {
    %c0_i32 = arith.constant 0 : i32
    %c0_i32_0 = arith.constant 0 : i32
    return %arg1, %arg2, %c0_i32 : i32, i32, i32
  }
  func.func @transform_1(%arg0: i32, %arg1: i32, %arg2: i32) -> (i32, i32) {
    %c0_i32 = arith.constant 0 : i32
    return %arg0, %arg2 : i32, i32
  }
  func.func @transform_2(%arg0: i32, %arg1: i32, %arg2: i32) -> (i32, i32) {
    %c0_i32 = arith.constant 0 : i32
    %c0_i32_0 = arith.constant 0 : i32
    return %arg0, %c0_i32 : i32, i32
  }
  func.func @transform_3(%arg0: i32, %arg1: i32, %arg2: i32) -> (i32, i32) {
    %c0_i32 = arith.constant 0 : i32
    %c0_i32_0 = arith.constant 0 : i32
    %c0_i32_1 = arith.constant 0 : i32
    return %c0_i32, %c0_i32_0 : i32, i32
  }
  func.func @transform_4(%arg0: i32, %arg1: i32, %arg2: i32) -> (i32, i32) {
    %c0_i32 = arith.constant 0 : i32
    %c0_i32_0 = arith.constant 0 : i32
    %c0_i32_1 = arith.constant 0 : i32
    return %c0_i32, %c0_i32_0 : i32, i32
  }
  func.func @transform_5(%arg0: i32, %arg1: i32, %arg2: i32) -> (i32, i32) {
    %c0_i32 = arith.constant 0 : i32
    %c0_i32_0 = arith.constant 0 : i32
    %c0_i32_1 = arith.constant 0 : i32
    return %c0_i32, %c0_i32_0 : i32, i32
  }
  func.func @transform_6(%arg0: i32, %arg1: i32, %arg2: i32) -> (i32, i32) {
    %c0_i32 = arith.constant 0 : i32
    %c0_i32_0 = arith.constant 0 : i32
    %c0_i32_1 = arith.constant 0 : i32
    return %c0_i32, %c0_i32_0 : i32, i32
  }
  func.func @transform_7(%arg0: i32, %arg1: i32, %arg2: i32) -> (i32, i32, i32) {
    %c0_i32 = arith.constant 0 : i32
    %c0_i32_0 = arith.constant 0 : i32
    return %arg1, %arg0, %c0_i32 : i32, i32, i32
  }
}

</mosaic_0001>

<bundles_post_ra>
// kernel: tpu_custom_call.1
= control target key start
LH: loop header
LB: loop body
LE: loop exit
PB: predicated region body
PF: predicated region fallthrough
CT: control target
= control target key end

     0   :  { %s2550_s24 = smov 0   ;;  %s2552_s25 = smov 0   ;;  %s3351_s0 = inlined_call_operand.vmem [shape: bf16[2,64,16], index: 0, kind: input, shape index: {}]   ;;  %s3352_s1 = inlined_call_operand.vmem [shape: bf16[512,64], index: 1, kind: input, shape index: {}]   ;;  %s3353_s2 = inlined_call_operand.vmem [shape: f32[512,1], index: 2, kind: input, shape index: {}]   ;;  %s3354_s3 = inlined_call_operand.vmem [shape: f32[1,16], index: 3, kind: input, shape index: {}]   ;;  %s3355_s4 = inlined_call_operand.vmem [shape: f32[1,16], index: 4, kind: input, shape index: {}]   ;;  %s3356_s5 = inlined_call_operand.vmem [shape: f32[16,8], index: 5, kind: input, shape index: {}]   ;;  %s3357_s6 = inlined_call_operand.vmem [shape: f32[1,8], index: 6, kind: input, shape index: {}]   ;;  %s3358_s7 = inlined_call_operand.vmem [shape: f32[2,512,8], index: 7, kind: output, shape index: {}]  }
   0x1   :  { %s2554_s26 = smov 0   ;;  %s2556_s27 = smov 0  }
   0x2   :  { %s2558_s28 = smov 0  }
   0x3 LB: > { %s32_s29 = sadd.s32 1, %s2498_s26  ;;  %s36_s30 = sadd.s32 1, %s2502_s27  ;;  %s2506_s28 = sphi %s2558_s28, %s17_s28   ;;  %s2502_s27 = sphi %s2556_s27, %s3362_s27   ;;  %s2498_s26 = sphi %s2554_s26, %s3361_s26   ;;  %s2494_s25 = sphi %s2552_s25, %s3360_s25   ;;  %s2490_s24 = sphi %s2550_s24, %s3359_s24  }
   0x4   : > { %p34_p0 = scmp.ge.s32.totalorder %s32_s29, 2  ;;  %p2110_p1 = scmp.ge.s32.totalorder %s2506_s28, 1 }
   0x5   : > { %p292_p2 = scmp.lt.s32.totalorder %s2506_s28, 5 }
   0x6   : > { %s3364_s29 = smov (%p34_p0, %s32_s29), 0  ;;  %s3366_s30 = smov (!%p34_p0, %s36_s30), %s2502_s27 }
   0x7   : > { %p293_p3 = pnand %p2110_p1, %p292_p2  ;;  %p38_p4 = scmp.ge.s32.totalorder %s3366_s30, 2 }
   0x8   : > { %p346_p5 = scmp.lt.s32.totalorder (!%p293_p3), %s2490_s24, 1  ;;  %s2113_s8 = sshll.u32 (!%p293_p3), %s2494_s25, 5 }
   0x9   : > { %s3368_s30 = smov (%p38_p4, %s3366_s30), 0  ;;  %296 = sbr.rel (%p293_p3) target bundleno = 812 (0x32c), region = 48 }
   0xa   : > { %p356_p6 = scmp.lt.s32.totalorder (!%p293_p3), %s2113_s8, 63 }
   0xe   : > { %v2508_v0 = vmov 0   ;;  %s3370_s24 = smov (!%p346_p5, %s2490_s24), 1  ;;  %s3372_s8 = smov (!%p356_p6, %s2113_s8), 63  ;;  %vm594_vm0 = vcmask 523264   ;;  %vm385_vm1 = vcmask 130048   ;;  %v2509_v42 = vmov 0.0  }
   0xf   : > { %2382 = vset.pattern.permute.xlu0 %v2508_v0  ;;  %2383 = vset.pattern.permute.xlu1 %v2508_v0  ;;  %s2193_s9 = sshll.u32 %s3370_s24, 5  ;;  %s2118_s10 = sshll.u32 %s3370_s24, 6  ;;  %388 = vst.msk [vmem:[#allocation2 + $0x10] sm:$0xff] %vm385_vm1, %v2509_v42  ;;  %386 = vst.msk [vmem:[#allocation2] sm:$0xff] %vm385_vm1, %v2509_v42  ;;  %vm1953_vm2 = vcmask 64512  }
  0x10   : > { %s353_s13 = scalar_lea.vmem %s3351_s0, %s2193_s9  ;;  %s2114_s14 = sshll.u32 %s3372_s8, 2  ;;  %387 = vst.msk [vmem:[#allocation2 + $0x8] sm:$0xff] %vm385_vm1, %v2509_v42  ;;  %389 = vst.msk [vmem:[#allocation2 + $0x18] sm:$0xff] %vm385_vm1, %v2509_v42 }
  0x11   : > { %v2384_v1 = vld [vmem:[%s353_s13 + $0x18] sm:$0xff]   ;;  %s2586_s17 = scalar_lea.vmem %s3352_s1, %s2114_s14  ;;  %s2588_s18 = sadd.s32 %s2118_s10, %s3372_s8  ;;  %v2385_v2 = vld [vmem:[%s353_s13 + $0x10] sm:$0xff]   ;;  %v2386_v3 = vld [vmem:[%s353_s13 + $0x8] sm:$0xff]   ;;  %390 = vst.msk [vmem:[#allocation2 + $0x20] sm:$0xff] %vm385_vm1, %v2509_v42 }
  0x12   : > { %2248 = vmatprep.subr.bf16.mxu0 %v2384_v1  ;;  %s2116_s19 = sshll.u32 %s3372_s8, 3  ;;  %v2388_v4 = vld [vmem:[%s2586_s17] sm:$0xff]   ;;  %v2389_v9 = vld [vmem:[%s2586_s17 + $0x8] sm:$0xff]   ;;  %v2390_v11 = vld [vmem:[%s2586_s17 + $0x10] sm:$0xff]   ;;  %391 = vst.msk [vmem:[#allocation2 + $0x28] sm:$0xff] %vm385_vm1, %v2509_v42 }
  0x13   : > { %2249 = vmatpush3.bf16.msra.mxu0 %v2384_v1  ;;  %2256 = vmatprep.mubr.msk.bf16.mxu0 %vm594_vm0, %v2388_v4  ;;  %s2595_s22 = scalar_lea.vmem %s3353_s2, %s2116_s19  ;;  %v2387_v5 = vld [vmem:[%s353_s13] sm:$0xff]   ;;  %v2391_v15 = vld [vmem:[%s2586_s17 + $0x18] sm:$0xff]   ;;  %v2393_v21 = vld [vmem:[%s2586_s17 + $0x28] sm:$0xff]   ;;  %392 = vst.msk [vmem:[#allocation2 + $0x30] sm:$0xff] %vm385_vm1, %v2509_v42  ;;  %s2119_s13 = sshll.u32 %s2588_s18, 3 }
  0x14   : > { %2250 = vmatprep.subr.bf16.mxu0 %v2385_v2  ;;  %v904_v6 = vld [vmem:[%s2595_s22] sm:$0xff]  ;;  %v906_v7 = vld [vmem:[%s2595_s22 + $0x10] sm:$0xff]  ;;  %v905_v8 = vld [vmem:[%s2595_s22 + $0x8] sm:$0xff]  ;;  %393 = vst.msk [vmem:[#allocation2 + $0x38] sm:$0xff] %vm385_vm1, %v2509_v42  ;;  %s3238_s19 = scalar_lea.vmem %s3358_s7, %s2119_s13 }
  0x15   : > { %938 = vperm.xlu0 %2382, %v904_v6   ;;  %948 = vperm.xlu1 %2383, %v906_v7   ;;  %v907_v10 = vld [vmem:[%s2595_s22 + $0x18] sm:$0xff]  ;;  %v908_v12 = vld [vmem:[%s2595_s22 + $0x20] sm:$0xff]  ;;  %v909_v13 = vld [vmem:[%s2595_s22 + $0x28] sm:$0xff]  ;;  %394 = vst.msk [vmem:[#allocation2 + $0x40] sm:$0xff] %vm385_vm1, %v2509_v42 }
  0x16   : > { %v910_v14 = vld [vmem:[%s2595_s22 + $0x30] sm:$0xff]  ;;  %v911_v16 = vld [vmem:[%s2595_s22 + $0x38] sm:$0xff]  ;;  %v2392_v17 = vld [vmem:[%s2586_s17 + $0x20] sm:$0xff]   ;;  %395 = vst.msk [vmem:[#allocation2 + $0x48] sm:$0xff] %vm385_vm1, %v2509_v42 }
  0x17   : > { %2251 = vmatpush3.bf16.msra.mxu0 %v2385_v2  ;;  %v912_v18 = vld [vmem:[%s2595_s22 + $0x40] sm:$0xff]  ;;  %v913_v19 = vld [vmem:[%s2595_s22 + $0x48] sm:$0xff]  ;;  %v914_v20 = vld [vmem:[%s2595_s22 + $0x50] sm:$0xff]  ;;  %396 = vst.msk [vmem:[#allocation2 + $0x50] sm:$0xff] %vm385_vm1, %v2509_v42 }
  0x18   : > { %2252 = vmatprep.subr.bf16.mxu0 %v2386_v3  ;;  %v915_v22 = vld [vmem:[%s2595_s22 + $0x58] sm:$0xff]  ;;  %v2394_v23 = vld [vmem:[%s2586_s17 + $0x30] sm:$0xff]   ;;  %v916_v24 = vld [vmem:[%s2595_s22 + $0x60] sm:$0xff]  ;;  %397 = vst.msk [vmem:[#allocation2 + $0x58] sm:$0xff] %vm385_vm1, %v2509_v42 }
  0x19   : > { %943 = vperm.xlu0 %2382, %v905_v8   ;;  %953 = vperm.xlu1 %2383, %v907_v10   ;;  %v917_v25 = vld [vmem:[%s2595_s22 + $0x68] sm:$0xff]  ;;  %v918_v26 = vld [vmem:[%s2595_s22 + $0x70] sm:$0xff]  ;;  %v2395_v27 = vld [vmem:[%s2586_s17 + $0x38] sm:$0xff]   ;;  %398 = vst.msk [vmem:[#allocation2 + $0x60] sm:$0xff] %vm385_vm1, %v2509_v42 }
  0x1a   : > { %v919_v28 = vld [vmem:[%s2595_s22 + $0x78] sm:$0xff]  ;;  %v2396_v29 = vld [vmem:[%s2586_s17 + $0x40] sm:$0xff]   ;;  %v921_v31 = vld [vmem:[%s2595_s22 + $0x88] sm:$0xff]  ;;  %399 = vst.msk [vmem:[#allocation2 + $0x68] sm:$0xff] %vm385_vm1, %v2509_v42 }
  0x1b   : > { %2253 = vmatpush3.bf16.msra.mxu0 %v2386_v3  ;;  %v920_v30 = vld [vmem:[%s2595_s22 + $0x80] sm:$0xff]  ;;  %v922_v32 = vld [vmem:[%s2595_s22 + $0x90] sm:$0xff]  ;;  %v2397_v33 = vld [vmem:[%s2586_s17 + $0x48] sm:$0xff]   ;;  %400 = vst.msk [vmem:[#allocation2 + $0x70] sm:$0xff] %vm385_vm1, %v2509_v42 }
  0x1c   : > { %2254 = vmatprep.subr.bf16.mxu0 %v2387_v5  ;;  %v923_v34 = vld [vmem:[%s2595_s22 + $0x98] sm:$0xff]  ;;  %v2398_v35 = vld [vmem:[%s2586_s17 + $0x50] sm:$0xff]   ;;  %v924_v36 = vld [vmem:[%s2595_s22 + $0xa0] sm:$0xff]  ;;  %401 = vst.msk [vmem:[#allocation2 + $0x78] sm:$0xff] %vm385_vm1, %v2509_v42 }
  0x1d   : > { %958 = vperm.xlu0 %2382, %v908_v12   ;;  %963 = vperm.xlu1 %2383, %v909_v13   ;;  %v925_v37 = vld [vmem:[%s2595_s22 + $0xa8] sm:$0xff]  ;;  %v926_v38 = vld [vmem:[%s2595_s22 + $0xb0] sm:$0xff]  ;;  %v2399_v39 = vld [vmem:[%s2586_s17 + $0x58] sm:$0xff]   ;;  %402 = vst.msk [vmem:[#allocation2 + $0x80] sm:$0xff] %vm385_vm1, %v2509_v42 }
  0x1e   : > { %v927_v40 = vld [vmem:[%s2595_s22 + $0xb8] sm:$0xff]  ;;  %v2400_v41 = vld [vmem:[%s2586_s17 + $0x60] sm:$0xff]   ;;  %403 = vst.msk [vmem:[#allocation2 + $0x88] sm:$0xff] %vm385_vm1, %v2509_v42  ;;  %404 = vst.msk [vmem:[#allocation2 + $0x90] sm:$0xff] %vm385_vm1, %v2509_v42 }
  0x1f   : > { %2255 = vmatpush3.bf16.msra.mxu0 %v2387_v5  ;;  %405 = vst.msk [vmem:[#allocation2 + $0x98] sm:$0xff] %vm385_vm1, %v2509_v42  ;;  %406 = vst.msk [vmem:[#allocation2 + $0xa0] sm:$0xff] %vm385_vm1, %v2509_v42  ;;  %v928_v43 = vld [vmem:[%s2595_s22 + $0xc0] sm:$0xff]  ;;  %v929_v44 = vld [vmem:[%s2595_s22 + $0xc8] sm:$0xff] }
  0x20   : > { %407 = vst.msk [vmem:[#allocation2 + $0xa8] sm:$0xff] %vm385_vm1, %v2509_v42  ;;  %408 = vst.msk [vmem:[#allocation2 + $0xb0] sm:$0xff] %vm385_vm1, %v2509_v42  ;;  %v930_v45 = vld [vmem:[%s2595_s22 + $0xd0] sm:$0xff]  ;;  %v2401_v46 = vld [vmem:[%s2586_s17 + $0x68] sm:$0xff]  }
  0x21   : > { %968 = vperm.xlu0 %2382, %v910_v14   ;;  %973 = vperm.xlu1 %2383, %v911_v16   ;;  %409 = vst.msk [vmem:[#allocation2 + $0xb8] sm:$0xff] %vm385_vm1, %v2509_v42  ;;  %410 = vst.msk [vmem:[#allocation2 + $0xc0] sm:$0xff] %vm385_vm1, %v2509_v42  ;;  %v931_v47 = vld [vmem:[%s2595_s22 + $0xd8] sm:$0xff]  ;;  %v2402_v48 = vld [vmem:[%s2586_s17 + $0x70] sm:$0xff]  }
  0x22   : > { %2257 = vmatmul.mubr.msk.bf16.vlgmr.msra.gmra.mxu0 %vm594_vm0, %v2389_v9  ;;  %411 = vst.msk [vmem:[#allocation2 + $0xc8] sm:$0xff] %vm385_vm1, %v2509_v42  ;;  %412 = vst.msk [vmem:[#allocation2 + $0xd0] sm:$0xff] %vm385_vm1, %v2509_v42  ;;  %v932_v49 = vld [vmem:[%s2595_s22 + $0xe0] sm:$0xff]  ;;  %v933_v50 = vld [vmem:[%s2595_s22 + $0xe8] sm:$0xff] }
  0x23   : > { %2260 = vmatprep.mubr.msk.bf16.mxu0 %vm594_vm0, %v2390_v11  ;;  %413 = vst.msk [vmem:[#allocation2 + $0xd8] sm:$0xff] %vm385_vm1, %v2509_v42  ;;  %414 = vst.msk [vmem:[#allocation2 + $0xe0] sm:$0xff] %vm385_vm1, %v2509_v42  ;;  %v934_v51 = vld [vmem:[%s2595_s22 + $0xf0] sm:$0xff]  ;;  %v2403_v52 = vld [vmem:[%s2586_s17 + $0x78] sm:$0xff]  }
  0x24   : > { %415 = vst.msk [vmem:[#allocation2 + $0xe8] sm:$0xff] %vm385_vm1, %v2509_v42  ;;  %416 = vst.msk [vmem:[#allocation2 + $0xf0] sm:$0xff] %vm385_vm1, %v2509_v42  ;;  %v935_v53 = vld [vmem:[%s2595_s22 + $0xf8] sm:$0xff]  ;;  %v420_v61 = vld [vmem:[#allocation2 + $0x10] sm:$0xff] }
  0x25   : > { %978 = vperm.xlu0 %2382, %v912_v18   ;;  %983 = vperm.xlu1 %2383, %v913_v19   ;;  %417 = vst.msk [vmem:[#allocation2 + $0xf8] sm:$0xff] %vm385_vm1, %v2509_v42  ;;  %v418_v63 = vld [vmem:[#allocation2] sm:$0xff]  ;;  %v421_v3 = vld [vmem:[#allocation2 + $0x18] sm:$0xff]  ;;  %v419_v7 = vld [vmem:[#allocation2 + $0x8] sm:$0xff] }
  0x26   : > { %v424_v10 = vld [vmem:[#allocation2 + $0x30] sm:$0xff]  ;;  %v422_v14 = vld [vmem:[#allocation2 + $0x20] sm:$0xff]  ;;  %v425_v18 = vld [vmem:[#allocation2 + $0x38] sm:$0xff] }
  0x29   : > { %988 = vperm.xlu0 %2382, %v914_v20   ;;  %993 = vperm.xlu1 %2383, %v915_v22  }
  0x2a   : > { %2261 = vmatmul.mubr.msk.bf16.gmra.mxu0 %vm594_vm0, %v2391_v15 }
  0x2b   : > { %2264 = vmatprep.mubr.msk.bf16.mxu0 %vm594_vm0, %v2392_v17 }
  0x2d   : > { %998 = vperm.xlu0 %2382, %v916_v24   ;;  %1003 = vperm.xlu1 %2383, %v917_v25  }
  0x31   : > { %1008 = vperm.xlu0 %2382, %v918_v26   ;;  %1013 = vperm.xlu1 %2383, %v919_v28   ;;  %v428_v28 = vld [vmem:[#allocation2 + $0x50] sm:$0xff] }
  0x32   : > { %2265 = vmatmul.mubr.msk.bf16.gmra.mxu0 %vm594_vm0, %v2393_v21  ;;  %v423_v21 = vld [vmem:[#allocation2 + $0x28] sm:$0xff] }
  0x33   : > { %2268 = vmatprep.mubr.msk.bf16.mxu0 %vm594_vm0, %v2394_v23 }
  0x35   : > { %1018 = vperm.xlu0 %2382, %v920_v30   ;;  %1023 = vperm.xlu1 %2383, %v921_v31  }
  0x39   : > { %1028 = vperm.xlu0 %2382, %v922_v32   ;;  %1033 = vperm.xlu1 %2383, %v923_v34   ;;  %v426_v34 = vld [vmem:[#allocation2 + $0x40] sm:$0xff] }
  0x3a   : > { %2269 = vmatmul.mubr.msk.bf16.gmra.mxu0 %vm594_vm0, %v2395_v27 }
  0x3b   : > { %2272 = vmatprep.mubr.msk.bf16.mxu0 %vm594_vm0, %v2396_v29 }
  0x3d   : > { %1038 = vperm.xlu0 %2382, %v924_v36   ;;  %1043 = vperm.xlu1 %2383, %v925_v37  }
  0x41   : > { %1048 = vperm.xlu0 %2382, %v926_v38   ;;  %1053 = vperm.xlu1 %2383, %v927_v40   ;;  %v429_v40 = vld [vmem:[#allocation2 + $0x58] sm:$0xff] }
  0x42   : > { %2273 = vmatmul.mubr.msk.bf16.gmra.mxu0 %vm594_vm0, %v2397_v33 }
  0x43   : > { %2276 = vmatprep.mubr.msk.bf16.mxu0 %vm594_vm0, %v2398_v35 }
  0x45   : > { %1058 = vperm.xlu0 %2382, %v928_v43   ;;  %1063 = vperm.xlu1 %2383, %v929_v44  }
  0x49   : > { %1068 = vperm.xlu0 %2382, %v930_v45   ;;  %1073 = vperm.xlu1 %2383, %v931_v47   ;;  %v427_v47 = vld [vmem:[#allocation2 + $0x48] sm:$0xff] }
  0x4a   : > { %2277 = vmatmul.mubr.msk.bf16.gmra.mxu0 %vm594_vm0, %v2399_v39 }
  0x4b   : > { %2280 = vmatprep.mubr.msk.bf16.mxu0 %vm594_vm0, %v2400_v41 }
  0x4d   : > { %1078 = vperm.xlu0 %2382, %v932_v49   ;;  %1083 = vperm.xlu1 %2383, %v933_v50  }
  0x51   : > { %1088 = vperm.xlu0 %2382, %v934_v51   ;;  %1093 = vperm.xlu1 %2383, %v935_v53  }
  0x52   : > { %2281 = vmatmul.mubr.msk.bf16.gmra.mxu0 %vm594_vm0, %v2401_v46 }
  0x53   : > { %2284 = vmatprep.mubr.msk.bf16.mxu0 %vm594_vm0, %v2402_v48 }
  0x5a   : > { %2285 = vmatmul.mubr.msk.bf16.gmra.mxu0 %vm594_vm0, %v2403_v52 }
  0x90   : > { %v939_v54 = vpop.permute.xlu0 %938  ;;  %v949_v55 = vpop.permute.xlu1 %948 }
  0x94   : > { %v944_v56 = vpop.permute.xlu0 %943  ;;  %v954_v57 = vpop.permute.xlu1 %953 }
  0x98   : > { %v2691_v58 = vpop.permute.xlu0 %958  ;;  %v2693_v59 = vpop.permute.xlu1 %963 }
  0x9c   : > { %v2695_v60 = vpop.permute.xlu0 %968  ;;  %v2697_v1 = vpop.permute.xlu1 %973 }
  0xa0   : > { %v2700_v5 = vpop.permute.xlu0 %978  ;;  %v2704_v12 = vpop.permute.xlu1 %983 }
  0xa4   : > { %v2707_v16 = vpop.permute.xlu0 %988  ;;  %v2713_v26 = vpop.permute.xlu1 %993 }
  0xa8   : > { %v2720_v32 = vpop.permute.xlu0 %998  ;;  %v2732_v45 = vpop.permute.xlu1 %1003 }
  0xac   : > { %v2738_v52 = vpop.permute.xlu0 %1008 }
  0xe2   : > { %v2258_v62 = vpop.f32.mrf.mxu0 }
  0xe3   : > { %v806_v0 = vadd.f32 %v2258_v62, %v420_v61  ;;  %v430_v62 = vld [vmem:[#allocation2 + $0x60] sm:$0xff] }
  0xe4   : > { %v677_v2 = vpop.f32.mrf.mxu0 }
  0xe5   : > { %839 = vst.msk [vmem:[#allocation2 + $0x10] sm:$0xff] %vm385_vm1, %v806_v0  ;;  %v804_v4 = vadd.f32 %v677_v2, %v418_v63 }
  0xe6   : > { %v2259_v6 = vpop.f32.mrf.mxu0 }
  0xe7   : > { %837 = vst.msk [vmem:[#allocation2] sm:$0xff] %vm385_vm1, %v804_v4  ;;  %v807_v8 = vadd.f32 %v2259_v6, %v421_v3  ;;  %v2752_v4 = vpop.permute.xlu1 %1013 }
  0xe8   : > { %v680_v9 = vpop.f32.mrf.mxu0 }
  0xe9   : > { %840 = vst.msk [vmem:[#allocation2 + $0x18] sm:$0xff] %vm385_vm1, %v807_v8  ;;  %v805_v11 = vadd.f32 %v680_v9, %v419_v7  ;;  %v433_v7 = vld [vmem:[#allocation2 + $0x78] sm:$0xff] }
  0xea   : > { %v2262_v13 = vpop.f32.mrf.mxu0 }
  0xeb   : > { %838 = vst.msk [vmem:[#allocation2 + $0x8] sm:$0xff] %vm385_vm1, %v805_v11  ;;  %v810_v15 = vadd.f32 %v2262_v13, %v424_v10  ;;  %v2762_v11 = vpop.permute.xlu0 %1018  ;;  %v431_v13 = vld [vmem:[#allocation2 + $0x68] sm:$0xff] }
  0xec   : > { %v693_v17 = vpop.f32.mrf.mxu0  ;;  %v874_v23 = vld [vmem:[#allocation2 + $0x10] sm:$0xff] }
  0xed   : > { %843 = vst.msk [vmem:[#allocation2 + $0x30] sm:$0xff] %vm385_vm1, %v810_v15  ;;  %v808_v19 = vadd.f32 %v693_v17, %v422_v14  ;;  %v2718_v31 = vadd.f32 %v949_v55, %v874_v23 }
  0xee   : > { %v2263_v20 = vpop.f32.mrf.mxu0  ;;  %v872_v22 = vld [vmem:[#allocation2] sm:$0xff] }
  0xef   : > { %841 = vst.msk [vmem:[#allocation2 + $0x20] sm:$0xff] %vm385_vm1, %v808_v19  ;;  %v811_v24 = vadd.f32 %v2263_v20, %v425_v18  ;;  %v2711_v25 = vadd.f32 %v939_v54, %v872_v22  ;;  %v1134_v42 = vsel %vm385_vm1, %v2718_v31, 0.0  ;;  %v432_v54 = vld [vmem:[#allocation2 + $0x70] sm:$0xff] }
  0xf0   : > { %v696_v27 = vpop.f32.mrf.mxu0  ;;  %v875_v36 = vld [vmem:[#allocation2 + $0x18] sm:$0xff]  ;;  %v436_v20 = vld [vmem:[#allocation2 + $0x90] sm:$0xff] }
  0xf1   : > { %844 = vst.msk [vmem:[#allocation2 + $0x38] sm:$0xff] %vm385_vm1, %v811_v24  ;;  %v809_v29 = vadd.f32 %v696_v27, %v423_v21  ;;  %v1128_v30 = vsel %vm385_vm1, %v2711_v25, 0.0  ;;  %v2730_v44 = vadd.f32 %v954_v57, %v875_v36  ;;  %v2776_v24 = vpop.permute.xlu1 %1023  ;;  %v434_v27 = vld [vmem:[#allocation2 + $0x80] sm:$0xff]  ;;  %v437_v36 = vld [vmem:[#allocation2 + $0x98] sm:$0xff] }
  0xf2   : > { %1129 = vadd.xlane.f32.xlu0 %v1128_v30  ;;  %v2266_v33 = vpop.f32.mrf.mxu0  ;;  %v873_v35 = vld [vmem:[#allocation2 + $0x8] sm:$0xff] }
  0xf3   : > { %842 = vst.msk [vmem:[#allocation2 + $0x28] sm:$0xff] %vm385_vm1, %v809_v29  ;;  %v814_v37 = vadd.f32 %v2266_v33, %v428_v28  ;;  %v2723_v38 = vadd.f32 %v944_v56, %v873_v35  ;;  %v1137_v56 = vsel %vm385_vm1, %v2730_v44, 0.0 }
  0xf4   : > { %v709_v39 = vpop.f32.mrf.mxu0  ;;  %v878_v49 = vld [vmem:[#allocation2 + $0x30] sm:$0xff] }
  0xf5   : > { %847 = vst.msk [vmem:[#allocation2 + $0x50] sm:$0xff] %vm385_vm1, %v814_v37  ;;  %v812_v41 = vadd.f32 %v709_v39, %v426_v34  ;;  %v1131_v43 = vsel %vm385_vm1, %v2723_v38, 0.0  ;;  %v2746_v61 = vadd.f32 %v2695_v60, %v878_v49  ;;  %v1029_v34 = vpop.permute.xlu0 %1028 }
  0xf6   : > { %1135 = vadd.xlane.f32.xlu0 %v1134_v42  ;;  %1132 = vadd.xlane.f32.xlu1 %v1131_v43  ;;  %v2267_v46 = vpop.f32.mrf.mxu0  ;;  %v876_v48 = vld [vmem:[#allocation2 + $0x20] sm:$0xff] }
  0xf7   : > { %845 = vst.msk [vmem:[#allocation2 + $0x40] sm:$0xff] %vm385_vm1, %v812_v41  ;;  %v815_v50 = vadd.f32 %v2267_v46, %v429_v40  ;;  %v2736_v51 = vadd.f32 %v2691_v58, %v876_v48  ;;  %v1146_v8 = vsel %vm385_vm1, %v2746_v61, 0.0  ;;  %v1034_v48 = vpop.permute.xlu1 %1033 }
  0xf8   : > { %v712_v53 = vpop.f32.mrf.mxu0  ;;  %v879_v0 = vld [vmem:[#allocation2 + $0x38] sm:$0xff] }
  0xf9   : > { %848 = vst.msk [vmem:[#allocation2 + $0x58] sm:$0xff] %vm385_vm1, %v815_v50  ;;  %v813_v55 = vadd.f32 %v712_v53, %v427_v47  ;;  %v1140_v57 = vsel %vm385_vm1, %v2736_v51, 0.0  ;;  %v2760_v10 = vadd.f32 %v2697_v1, %v879_v0  ;;  %v440_v50 = vld [vmem:[#allocation2 + $0xb0] sm:$0xff] }
  0xfa   : > { %1138 = vadd.xlane.f32.xlu0 %v1137_v56  ;;  %1141 = vadd.xlane.f32.xlu1 %v1140_v57  ;;  %v2270_v58 = vpop.f32.mrf.mxu0  ;;  %v877_v63 = vld [vmem:[#allocation2 + $0x28] sm:$0xff]  ;;  %v1039_v56 = vpop.permute.xlu0 %1038  ;;  %v438_v57 = vld [vmem:[#allocation2 + $0xa0] sm:$0xff] }
  0xfb   : > { %846 = vst.msk [vmem:[#allocation2 + $0x48] sm:$0xff] %vm385_vm1, %v813_v55  ;;  %v818_v2 = vadd.f32 %v2270_v58, %v432_v54  ;;  %v2750_v3 = vadd.f32 %v2693_v59, %v877_v63  ;;  %v1149_v21 = vsel %vm385_vm1, %v2760_v10, 0.0 }
  0xfc   : > { %v725_v6 = vpop.f32.mrf.mxu0  ;;  %v882_v15 = vld [vmem:[#allocation2 + $0x50] sm:$0xff] }
  0xfd   : > { %851 = vst.msk [vmem:[#allocation2 + $0x70] sm:$0xff] %vm385_vm1, %v818_v2  ;;  %v816_v60 = vadd.f32 %v725_v6, %v430_v62  ;;  %v1143_v9 = vsel %vm385_vm1, %v2750_v3, 0.0  ;;  %v2774_v23 = vadd.f32 %v2707_v16, %v882_v15  ;;  %v441_v6 = vld [vmem:[#allocation2 + $0xb8] sm:$0xff] }
  0xfe   : > { %1147 = vadd.xlane.f32.xlu1 %v1146_v8  ;;  %1144 = vadd.xlane.f32.xlu0 %v1143_v9  ;;  %v2271_v59 = vpop.f32.mrf.mxu0  ;;  %v880_v14 = vld [vmem:[#allocation2 + $0x40] sm:$0xff]  ;;  %v1044_v9 = vpop.permute.xlu1 %1043 }
  0xff   : > { %849 = vst.msk [vmem:[#allocation2 + $0x60] sm:$0xff] %vm385_vm1, %v816_v60  ;;  %v819_v17 = vadd.f32 %v2271_v59, %v433_v7  ;;  %v2766_v18 = vadd.f32 %v2700_v5, %v880_v14  ;;  %v1158_v37 = vsel %vm385_vm1, %v2774_v23, 0.0 }
 0x100   : > { %v728_v19 = vpop.f32.mrf.mxu0  ;;  %v883_v29 = vld [vmem:[#allocation2 + $0x58] sm:$0xff] }
 0x101   : > { %852 = vst.msk [vmem:[#allocation2 + $0x78] sm:$0xff] %vm385_vm1, %v819_v17  ;;  %v817_v1 = vadd.f32 %v728_v19, %v431_v13  ;;  %v1152_v22 = vsel %vm385_vm1, %v2766_v18, 0.0  ;;  %v2788_v40 = vadd.f32 %v2713_v26, %v883_v29  ;;  %v1049_v19 = vpop.permute.xlu0 %1048 }
 0x102   : > { %1150 = vadd.xlane.f32.xlu0 %v1149_v21  ;;  %1153 = vadd.xlane.f32.xlu1 %v1152_v22  ;;  %v2274_v5 = vpop.f32.mrf.mxu0  ;;  %v881_v28 = vld [vmem:[#allocation2 + $0x48] sm:$0xff] }
 0x103   : > { %850 = vst.msk [vmem:[#allocation2 + $0x68] sm:$0xff] %vm385_vm1, %v817_v1  ;;  %v822_v30 = vadd.f32 %v2274_v5, %v436_v20  ;;  %v2780_v33 = vadd.f32 %v2704_v12, %v881_v28  ;;  %v435_v12 = vld [vmem:[#allocation2 + $0x88] sm:$0xff]  ;;  %v1161_v26 = vsel %vm385_vm1, %v2788_v40, 0.0  ;;  %v444_v1 = vld [vmem:[#allocation2 + $0xd0] sm:$0xff]  ;;  %v442_v28 = vld [vmem:[#allocation2 + $0xc0] sm:$0xff] }
 0x104   : > { %v741_v35 = vpop.f32.mrf.mxu0  ;;  %v886_v43 = vld [vmem:[#allocation2 + $0x70] sm:$0xff] }
 0x105   : > { %855 = vst.msk [vmem:[#allocation2 + $0x90] sm:$0xff] %vm385_vm1, %v822_v30  ;;  %v820_v16 = vadd.f32 %v741_v35, %v434_v27  ;;  %v1155_v39 = vsel %vm385_vm1, %v2780_v33, 0.0  ;;  %v2800_v55 = vadd.f32 %v2738_v52, %v886_v43 }
 0x106   : > { %1159 = vadd.xlane.f32.xlu1 %v1158_v37  ;;  %1156 = vadd.xlane.f32.xlu0 %v1155_v39  ;;  %v2275_v41 = vpop.f32.mrf.mxu0  ;;  %v884_v42 = vld [vmem:[#allocation2 + $0x60] sm:$0xff]  ;;  %v445_v37 = vld [vmem:[#allocation2 + $0xd8] sm:$0xff] }
 0x107   : > { %853 = vst.msk [vmem:[#allocation2 + $0x80] sm:$0xff] %vm385_vm1, %v820_v16  ;;  %v823_v46 = vadd.f32 %v2275_v41, %v437_v36  ;;  %v2792_v47 = vadd.f32 %v2720_v32, %v884_v42  ;;  %v1170_v52 = vsel %vm385_vm1, %v2800_v55, 0.0  ;;  %v1054_v36 = vpop.permute.xlu1 %1053  ;;  %v1059_v42 = vpop.permute.xlu0 %1058 }
 0x108   : > { %v744_v49 = vpop.f32.mrf.mxu0  ;;  %v887_v62 = vld [vmem:[#allocation2 + $0x78] sm:$0xff] }
 0x109   : > { %856 = vst.msk [vmem:[#allocation2 + $0x98] sm:$0xff] %vm385_vm1, %v823_v46  ;;  %v821_v53 = vadd.f32 %v744_v49, %v435_v12  ;;  %v1164_v54 = vsel %vm385_vm1, %v2792_v47, 0.0  ;;  %v2812_v8 = vadd.f32 %v2752_v4, %v887_v62 }
 0x10a   : > { %1162 = vadd.xlane.f32.xlu0 %v1161_v26  ;;  %1165 = vadd.xlane.f32.xlu1 %v1164_v54  ;;  %v2278_v32 = vpop.f32.mrf.mxu0  ;;  %v885_v58 = vld [vmem:[#allocation2 + $0x68] sm:$0xff]  ;;  %v448_v54 = vld [vmem:[#allocation2 + $0xf0] sm:$0xff] }
 0x10b   : > { %854 = vst.msk [vmem:[#allocation2 + $0x88] sm:$0xff] %vm385_vm1, %v821_v53  ;;  %v826_v63 = vadd.f32 %v2278_v32, %v440_v50  ;;  %v2804_v0 = vadd.f32 %v2732_v45, %v885_v58  ;;  %v439_v45 = vld [vmem:[#allocation2 + $0xa8] sm:$0xff]  ;;  %v1173_v21 = vsel %vm385_vm1, %v2812_v8, 0.0  ;;  %v1064_v62 = vpop.permute.xlu1 %1063 }
 0x10c   : > { %v757_v2 = vpop.f32.mrf.mxu0  ;;  %v890_v14 = vld [vmem:[#allocation2 + $0x90] sm:$0xff] }
 0x10d   : > { %859 = vst.msk [vmem:[#allocation2 + $0xb0] sm:$0xff] %vm385_vm1, %v826_v63  ;;  %v824_v7 = vadd.f32 %v757_v2, %v438_v57  ;;  %v1167_v60 = vsel %vm385_vm1, %v2804_v0, 0.0  ;;  %v2823_v5 = vadd.f32 %v1029_v34, %v890_v14  ;;  %v446_v2 = vld [vmem:[#allocation2 + $0xe0] sm:$0xff] }
 0x10e   : > { %1171 = vadd.xlane.f32.xlu1 %v1170_v52  ;;  %1168 = vadd.xlane.f32.xlu0 %v1167_v60  ;;  %v2279_v59 = vpop.f32.mrf.mxu0  ;;  %v888_v13 = vld [vmem:[#allocation2 + $0x80] sm:$0xff]  ;;  %v1069_v60 = vpop.permute.xlu0 %1068 }
 0x10f   : > { %857 = vst.msk [vmem:[#allocation2 + $0xa0] sm:$0xff] %vm385_vm1, %v824_v7  ;;  %v827_v15 = vadd.f32 %v2279_v59, %v441_v6  ;;  %v2816_v17 = vadd.f32 %v2762_v11, %v888_v13  ;;  %v1182_v34 = vsel %vm385_vm1, %v2823_v5, 0.0 }
 0x110   : > { %v760_v20 = vpop.f32.mrf.mxu0  ;;  %v891_v29 = vld [vmem:[#allocation2 + $0x98] sm:$0xff] }
 0x111   : > { %860 = vst.msk [vmem:[#allocation2 + $0xb8] sm:$0xff] %vm385_vm1, %v827_v15  ;;  %v825_v4 = vadd.f32 %v760_v20, %v439_v45  ;;  %v1176_v22 = vsel %vm385_vm1, %v2816_v17, 0.0  ;;  %v2834_v12 = vadd.f32 %v1034_v48, %v891_v29  ;;  %v449_v45 = vld [vmem:[#allocation2 + $0xf8] sm:$0xff] }
 0x112   : > { %1174 = vadd.xlane.f32.xlu0 %v1173_v21  ;;  %1177 = vadd.xlane.f32.xlu1 %v1176_v22  ;;  %v2282_v27 = vpop.f32.mrf.mxu0  ;;  %v889_v11 = vld [vmem:[#allocation2 + $0x88] sm:$0xff] }
 0x113   : > { %858 = vst.msk [vmem:[#allocation2 + $0xa8] sm:$0xff] %vm385_vm1, %v825_v4  ;;  %v830_v30 = vadd.f32 %v2282_v27, %v444_v1  ;;  %v2827_v35 = vadd.f32 %v2776_v24, %v889_v11  ;;  %v443_v24 = vld [vmem:[#allocation2 + $0xc8] sm:$0xff]  ;;  %v1185_v48 = vsel %vm385_vm1, %v2834_v12, 0.0  ;;  %v1074_v27 = vpop.permute.xlu1 %1073 }
 0x114   : > { %v773_v16 = vpop.f32.mrf.mxu0  ;;  %v894_v49 = vld [vmem:[#allocation2 + $0xb0] sm:$0xff]  ;;  %v447_v1 = vld [vmem:[#allocation2 + $0xe8] sm:$0xff] }
 0x115   : > { %863 = vst.msk [vmem:[#allocation2 + $0xd0] sm:$0xff] %vm385_vm1, %v830_v30  ;;  %v828_v39 = vadd.f32 %v773_v16, %v442_v28  ;;  %v1179_v41 = vsel %vm385_vm1, %v2827_v35, 0.0  ;;  %v2844_v58 = vadd.f32 %v1049_v19, %v894_v49  ;;  %v1079_v16 = vpop.permute.xlu0 %1078 }
 0x116   : > { %1183 = vadd.xlane.f32.xlu1 %v1182_v34  ;;  %1180 = vadd.xlane.f32.xlu0 %v1179_v41  ;;  %v2283_v43 = vpop.f32.mrf.mxu0  ;;  %v892_v46 = vld [vmem:[#allocation2 + $0xa0] sm:$0xff] }
 0x117   : > { %861 = vst.msk [vmem:[#allocation2 + $0xc0] sm:$0xff] %vm385_vm1, %v828_v39  ;;  %v831_v50 = vadd.f32 %v2283_v43, %v445_v37  ;;  %v2837_v53 = vadd.f32 %v1039_v56, %v892_v46  ;;  %v1194_v14 = vsel %vm385_vm1, %v2844_v58, 0.0 }
 0x118   : > { %v776_v26 = vpop.f32.mrf.mxu0  ;;  %v895_v6 = vld [vmem:[#allocation2 + $0xb8] sm:$0xff] }
 0x119   : > { %864 = vst.msk [vmem:[#allocation2 + $0xd8] sm:$0xff] %vm385_vm1, %v831_v50  ;;  %v829_v32 = vadd.f32 %v776_v26, %v443_v24  ;;  %v1188_v57 = vsel %vm385_vm1, %v2837_v53, 0.0  ;;  %v2854_v19 = vadd.f32 %v1054_v36, %v895_v6  ;;  %v1084_v24 = vpop.permute.xlu1 %1083  ;;  %v1089_v26 = vpop.permute.xlu0 %1088 }
 0x11a   : > { %1186 = vadd.xlane.f32.xlu0 %v1185_v48  ;;  %1189 = vadd.xlane.f32.xlu1 %v1188_v57  ;;  %v2286_v63 = vpop.f32.mrf.mxu0  ;;  %v893_v56 = vld [vmem:[#allocation2 + $0xa8] sm:$0xff] }
 0x11b   : > { %862 = vst.msk [vmem:[#allocation2 + $0xc8] sm:$0xff] %vm385_vm1, %v829_v32  ;;  %v834_v7 = vadd.f32 %v2286_v63, %v448_v54  ;;  %v2847_v52 = vadd.f32 %v1044_v9, %v893_v56  ;;  %v1197_v29 = vsel %vm385_vm1, %v2854_v19, 0.0 }
 0x11c   : > { %v789_v59 = vpop.f32.mrf.mxu0  ;;  %v898_v4 = vld [vmem:[#allocation2 + $0xd0] sm:$0xff] }
 0x11d   : > { %867 = vst.msk [vmem:[#allocation2 + $0xf0] sm:$0xff] %vm385_vm1, %v834_v7  ;;  %v832_v13 = vadd.f32 %v789_v59, %v446_v2  ;;  %v1191_v15 = vsel %vm385_vm1, %v2847_v52, 0.0  ;;  %v2864_v36 = vadd.f32 %v1069_v60, %v898_v4  ;;  %v1094_v2 = vpop.permute.xlu1 %1093 }
 0x11e   : > { %1195 = vadd.xlane.f32.xlu1 %v1194_v14  ;;  %1192 = vadd.xlane.f32.xlu0 %v1191_v15  ;;  %v2287_v20 = vpop.f32.mrf.mxu0  ;;  %v896_v9 = vld [vmem:[#allocation2 + $0xc0] sm:$0xff] }
 0x11f   : > { %865 = vst.msk [vmem:[#allocation2 + $0xe0] sm:$0xff] %vm385_vm1, %v832_v13  ;;  %v835_v21 = vadd.f32 %v2287_v20, %v449_v45  ;;  %v2857_v22 = vadd.f32 %v1059_v42, %v896_v9  ;;  %v1206_v41 = vsel %vm385_vm1, %v2864_v36, 0.0 }
 0x120   : > { %v792_v28 = vpop.f32.mrf.mxu0  ;;  %v899_v39 = vld [vmem:[#allocation2 + $0xd8] sm:$0xff] }
 0x121   : > { %868 = vst.msk [vmem:[#allocation2 + $0xf8] sm:$0xff] %vm385_vm1, %v835_v21  ;;  %v833_v11 = vadd.f32 %v792_v28, %v447_v1  ;;  %v1200_v30 = vsel %vm385_vm1, %v2857_v22, 0.0  ;;  %v2873_v43 = vadd.f32 %v1074_v27, %v899_v39 }
 0x122   : > { %1198 = vadd.xlane.f32.xlu0 %v1197_v29  ;;  %1201 = vadd.xlane.f32.xlu1 %v1200_v30  ;;  %v897_v37 = vld [vmem:[#allocation2 + $0xc8] sm:$0xff] }
 0x123   : > { %866 = vst.msk [vmem:[#allocation2 + $0xe8] sm:$0xff] %vm385_vm1, %v833_v11  ;;  %v2867_v34 = vadd.f32 %v1064_v62, %v897_v37  ;;  %v1209_v54 = vsel %vm385_vm1, %v2873_v43, 0.0 }
 0x124   : > { %v902_v49 = vld [vmem:[#allocation2 + $0xf0] sm:$0xff] }
 0x125   : > { %v1203_v42 = vsel %vm385_vm1, %v2867_v34, 0.0  ;;  %v2881_v48 = vadd.f32 %v1089_v26, %v902_v49 }
 0x126   : > { %1207 = vadd.xlane.f32.xlu1 %v1206_v41  ;;  %1204 = vadd.xlane.f32.xlu0 %v1203_v42  ;;  %v900_v46 = vld [vmem:[#allocation2 + $0xe0] sm:$0xff] }
 0x127   : > { %v2875_v50 = vadd.f32 %v1079_v16, %v900_v46  ;;  %v1218_v56 = vsel %vm385_vm1, %v2881_v48, 0.0 }
 0x128   : > { %v903_v62 = vld [vmem:[#allocation2 + $0xf8] sm:$0xff] }
 0x129   : > { %v1212_v32 = vsel %vm385_vm1, %v2875_v50, 0.0  ;;  %v2889_v7 = vadd.f32 %v1094_v2, %v903_v62 }
 0x12a   : > { %1210 = vadd.xlane.f32.xlu0 %v1209_v54  ;;  %1213 = vadd.xlane.f32.xlu1 %v1212_v32  ;;  %v901_v57 = vld [vmem:[#allocation2 + $0xe8] sm:$0xff] }
 0x12b   : > { %v2883_v63 = vadd.f32 %v1084_v24, %v901_v57  ;;  %v1221_v60 = vsel %vm385_vm1, %v2889_v7, 0.0 }
 0x12d   : > { %v1215_v6 = vsel %vm385_vm1, %v2883_v63, 0.0 }
 0x12e   : > { %1219 = vadd.xlane.f32.xlu1 %v1218_v56  ;;  %1216 = vadd.xlane.f32.xlu0 %v1215_v6 }
 0x132   : > { %1222 = vadd.xlane.f32.xlu0 %v1221_v60 }
 0x17b   : > { %v1130_v59 = vpop.xlane.xlu0 %1129 }
 0x17c   : > { %v1225_v45 = vmul.f32 0.0625, %v1130_v59 }
 0x17e   : > { %v2894_v13 = vsub.f32 %v2711_v25, %v1225_v45 }
 0x17f   : > { %v1136_v14 = vpop.xlane.xlu0 %1135  ;;  %v1133_v15 = vpop.xlane.xlu1 %1132 }
 0x180   : > { %v1227_v20 = vmul.f32 0.0625, %v1136_v14  ;;  %v1226_v1 = vmul.f32 0.0625, %v1133_v15  ;;  %v1289_v9 = vmul.f32 %v2894_v13, %v2894_v13 }
 0x182   : > { %v2899_v4 = vsub.f32 %v2718_v31, %v1227_v20  ;;  %v2902_v21 = vsub.f32 %v2723_v38, %v1226_v1  ;;  %v1321_v27 = vsel %vm385_vm1, %v1289_v9, 0.0 }
 0x183   : > { %v1139_v28 = vpop.xlane.xlu0 %1138  ;;  %v1142_v11 = vpop.xlane.xlu1 %1141  ;;  %1322 = vadd.xlane.f32.xlu1 %v1321_v27 }
 0x184   : > { %v1228_v25 = vmul.f32 0.0625, %v1139_v28  ;;  %v1229_v29 = vmul.f32 0.0625, %v1142_v11  ;;  %v1291_v30 = vmul.f32 %v2899_v4, %v2899_v4  ;;  %v1290_v16 = vmul.f32 %v2902_v21, %v2902_v21 }
 0x186   : > { %v2910_v37 = vsub.f32 %v2730_v44, %v1228_v25  ;;  %v2913_v31 = vsub.f32 %v2736_v51, %v1229_v29  ;;  %v1327_v38 = vsel %vm385_vm1, %v1291_v30, 0.0  ;;  %v1324_v39 = vsel %vm385_vm1, %v1290_v16, 0.0 }
 0x187   : > { %v1148_v41 = vpop.xlane.xlu1 %1147  ;;  %v1145_v42 = vpop.xlane.xlu0 %1144  ;;  %1328 = vadd.xlane.f32.xlu1 %v1327_v38  ;;  %1325 = vadd.xlane.f32.xlu0 %v1324_v39 }
 0x188   : > { %v1231_v24 = vmul.f32 0.0625, %v1148_v41  ;;  %v1230_v46 = vmul.f32 0.0625, %v1145_v42  ;;  %v1293_v49 = vmul.f32 %v2913_v31, %v2913_v31  ;;  %v1292_v44 = vmul.f32 %v2910_v37, %v2910_v37 }
 0x18a   : > { %v2922_v26 = vsub.f32 %v2746_v61, %v1231_v24  ;;  %v2925_v51 = vsub.f32 %v2750_v3, %v1230_v46  ;;  %v1333_v54 = vsel %vm385_vm1, %v1293_v49, 0.0  ;;  %v1330_v32 = vsel %vm385_vm1, %v1292_v44, 0.0 }
 0x18b   : > { %v1151_v57 = vpop.xlane.xlu0 %1150  ;;  %v1154_v62 = vpop.xlane.xlu1 %1153  ;;  %1334 = vadd.xlane.f32.xlu1 %v1333_v54  ;;  %1331 = vadd.xlane.f32.xlu0 %v1330_v32 }
 0x18c   : > { %v1232_v2 = vmul.f32 0.0625, %v1151_v57  ;;  %v1233_v56 = vmul.f32 0.0625, %v1154_v62  ;;  %v1295_v6 = vmul.f32 %v2922_v26, %v2922_v26  ;;  %v1294_v61 = vmul.f32 %v2925_v51, %v2925_v51 }
 0x18e   : > { %v2934_v60 = vsub.f32 %v2760_v10, %v1232_v2  ;;  %v2937_v3 = vsub.f32 %v2766_v18, %v1233_v56  ;;  %v1339_v59 = vsel %vm385_vm1, %v1295_v6, 0.0  ;;  %v1336_v45 = vsel %vm385_vm1, %v1294_v61, 0.0 }
 0x18f   : > { %v1160_v14 = vpop.xlane.xlu1 %1159  ;;  %v1157_v15 = vpop.xlane.xlu0 %1156  ;;  %1340 = vadd.xlane.f32.xlu1 %v1339_v59  ;;  %1337 = vadd.xlane.f32.xlu0 %v1336_v45 }
 0x190   : > { %v1235_v20 = vmul.f32 0.0625, %v1160_v14  ;;  %v1234_v1 = vmul.f32 0.0625, %v1157_v15  ;;  %v1297_v9 = vmul.f32 %v2937_v3, %v2937_v3  ;;  %v1296_v10 = vmul.f32 %v2934_v60, %v2934_v60 }
 0x192   : > { %v2946_v27 = vsub.f32 %v2774_v23, %v1235_v20  ;;  %v2949_v18 = vsub.f32 %v2780_v33, %v1234_v1  ;;  %v1345_v28 = vsel %vm385_vm1, %v1297_v9, 0.0  ;;  %v1342_v11 = vsel %vm385_vm1, %v1296_v10, 0.0 }
 0x193   : > { %v1163_v25 = vpop.xlane.xlu0 %1162  ;;  %v1166_v29 = vpop.xlane.xlu1 %1165  ;;  %1346 = vadd.xlane.f32.xlu1 %v1345_v28  ;;  %1343 = vadd.xlane.f32.xlu0 %v1342_v11 }
 0x194   : > { %v1236_v30 = vmul.f32 0.0625, %v1163_v25  ;;  %v1237_v16 = vmul.f32 0.0625, %v1166_v29  ;;  %v1299_v38 = vmul.f32 %v2946_v27, %v2946_v27  ;;  %v1298_v23 = vmul.f32 %v2949_v18, %v2949_v18 }
 0x196   : > { %v2958_v39 = vsub.f32 %v2788_v40, %v1236_v30  ;;  %v2961_v33 = vsub.f32 %v2792_v47, %v1237_v16  ;;  %v1351_v41 = vsel %vm385_vm1, %v1299_v38, 0.0  ;;  %v1348_v42 = vsel %vm385_vm1, %v1298_v23, 0.0 }
 0x197   : > { %v1172_v24 = vpop.xlane.xlu1 %1171  ;;  %v1169_v46 = vpop.xlane.xlu0 %1168  ;;  %1352 = vadd.xlane.f32.xlu1 %v1351_v41  ;;  %1349 = vadd.xlane.f32.xlu0 %v1348_v42 }
 0x198   : > { %v1239_v49 = vmul.f32 0.0625, %v1172_v24  ;;  %v1238_v44 = vmul.f32 0.0625, %v1169_v46  ;;  %v1301_v54 = vmul.f32 %v2961_v33, %v2961_v33  ;;  %v1300_v40 = vmul.f32 %v2958_v39, %v2958_v39 }
 0x19a   : > { %v2970_v32 = vsub.f32 %v2800_v55, %v1239_v49  ;;  %v2973_v47 = vsub.f32 %v2804_v0, %v1238_v44  ;;  %v1357_v57 = vsel %vm385_vm1, %v1301_v54, 0.0  ;;  %v1354_v62 = vsel %vm385_vm1, %v1300_v40, 0.0  ;;  %v1623_v40 = vld [vmem:[%s3356_s5] sm:$0xff] }
 0x19b   : > { %v1175_v2 = vpop.xlane.xlu0 %1174  ;;  %v1178_v56 = vpop.xlane.xlu1 %1177  ;;  %1358 = vadd.xlane.f32.xlu1 %v1357_v57  ;;  %1355 = vadd.xlane.f32.xlu0 %v1354_v62 }
 0x19c   : > { %v1240_v6 = vmul.f32 0.0625, %v1175_v2  ;;  %v1241_v61 = vmul.f32 0.0625, %v1178_v56  ;;  %v1303_v59 = vmul.f32 %v2970_v32, %v2970_v32  ;;  %v1302_v55 = vmul.f32 %v2973_v47, %v2973_v47 }
 0x19e   : > { %v2982_v45 = vsub.f32 %v2812_v8, %v1240_v6  ;;  %v2985_v0 = vsub.f32 %v2816_v17, %v1241_v61  ;;  %v1363_v14 = vsel %vm385_vm1, %v1303_v59, 0.0  ;;  %v1360_v15 = vsel %vm385_vm1, %v1302_v55, 0.0 }
 0x19f   : > { %v1184_v20 = vpop.xlane.xlu1 %1183  ;;  %v1181_v1 = vpop.xlane.xlu0 %1180  ;;  %1364 = vadd.xlane.f32.xlu1 %v1363_v14  ;;  %1361 = vadd.xlane.f32.xlu0 %v1360_v15 }
 0x1a0   : > { %v1243_v9 = vmul.f32 0.0625, %v1184_v20  ;;  %v1242_v10 = vmul.f32 0.0625, %v1181_v1  ;;  %v1305_v28 = vmul.f32 %v2985_v0, %v2985_v0  ;;  %v1304_v8 = vmul.f32 %v2982_v45, %v2982_v45 }
 0x1a2   : > { %v2994_v11 = vsub.f32 %v2823_v5, %v1243_v9  ;;  %v2997_v17 = vsub.f32 %v2827_v35, %v1242_v10  ;;  %v1369_v25 = vsel %vm385_vm1, %v1305_v28, 0.0  ;;  %v1366_v29 = vsel %vm385_vm1, %v1304_v8, 0.0  ;;  %v1624_v35 = vld [vmem:[%s3356_s5 + $0x8] sm:$0xff] }
 0x1a3   : > { %v1187_v30 = vpop.xlane.xlu0 %1186  ;;  %v1190_v16 = vpop.xlane.xlu1 %1189  ;;  %1370 = vadd.xlane.f32.xlu1 %v1369_v25  ;;  %1367 = vadd.xlane.f32.xlu0 %v1366_v29 }
 0x1a4   : > { %v1244_v38 = vmul.f32 0.0625, %v1187_v30  ;;  %v1245_v23 = vmul.f32 0.0625, %v1190_v16  ;;  %v1307_v41 = vmul.f32 %v2994_v11, %v2994_v11  ;;  %v1306_v5 = vmul.f32 %v2997_v17, %v2997_v17  ;;  %2288 = vmatprep.subr.mxu1 %v1624_v35 }
 0x1a5   : > { %2289 = vmatpush3.msra.mxu1 %v1624_v35 }
 0x1a6   : > { %v3009_v42 = vsub.f32 %v2834_v12, %v1244_v38  ;;  %v3012_v24 = vsub.f32 %v2837_v53, %v1245_v23  ;;  %v1375_v46 = vsel %vm385_vm1, %v1307_v41, 0.0  ;;  %v1372_v49 = vsel %vm385_vm1, %v1306_v5, 0.0  ;;  %2290 = vmatprep.subr.mxu1 %v1623_v40 }
 0x1a7   : > { %v1196_v44 = vpop.xlane.xlu1 %1195  ;;  %v1193_v54 = vpop.xlane.xlu0 %1192  ;;  %1376 = vadd.xlane.f32.xlu1 %v1375_v46  ;;  %1373 = vadd.xlane.f32.xlu0 %v1372_v49 }
 0x1a8   : > { %v1247_v57 = vmul.f32 0.0625, %v1196_v44  ;;  %v1246_v62 = vmul.f32 0.0625, %v1193_v54  ;;  %v1309_v12 = vmul.f32 %v3012_v24, %v3012_v24  ;;  %v1308_v53 = vmul.f32 %v3009_v42, %v3009_v42  ;;  %2291 = vmatpush3.msra.mxu1 %v1623_v40 }
 0x1aa   : > { %v3024_v2 = vsub.f32 %v2844_v58, %v1247_v57  ;;  %v3027_v56 = vsub.f32 %v2847_v52, %v1246_v62  ;;  %v1381_v6 = vsel %vm385_vm1, %v1309_v12, 0.0  ;;  %v1378_v61 = vsel %vm385_vm1, %v1308_v53, 0.0 }
 0x1ab   : > { %v1199_v59 = vpop.xlane.xlu0 %1198  ;;  %v1202_v55 = vpop.xlane.xlu1 %1201  ;;  %1382 = vadd.xlane.f32.xlu1 %v1381_v6  ;;  %1379 = vadd.xlane.f32.xlu0 %v1378_v61 }
 0x1ac   : > { %v1248_v14 = vmul.f32 0.0625, %v1199_v59  ;;  %v1249_v15 = vmul.f32 0.0625, %v1202_v55  ;;  %v1311_v20 = vmul.f32 %v3024_v2, %v3024_v2  ;;  %v1310_v58 = vmul.f32 %v3027_v56, %v3027_v56 }
 0x1ae   : > { %v3036_v52 = vsub.f32 %v2854_v19, %v1248_v14  ;;  %v3039_v1 = vsub.f32 %v2857_v22, %v1249_v15  ;;  %v1387_v9 = vsel %vm385_vm1, %v1311_v20, 0.0  ;;  %v1384_v10 = vsel %vm385_vm1, %v1310_v58, 0.0 }
 0x1af   : > { %v1208_v28 = vpop.xlane.xlu1 %1207  ;;  %v1205_v8 = vpop.xlane.xlu0 %1204  ;;  %1388 = vadd.xlane.f32.xlu1 %v1387_v9  ;;  %1385 = vadd.xlane.f32.xlu0 %v1384_v10 }
 0x1b0   : > { %v1251_v25 = vmul.f32 0.0625, %v1208_v28  ;;  %v1250_v29 = vmul.f32 0.0625, %v1205_v8  ;;  %v1313_v30 = vmul.f32 %v3039_v1, %v3039_v1  ;;  %v1312_v19 = vmul.f32 %v3036_v52, %v3036_v52 }
 0x1b2   : > { %v3048_v16 = vsub.f32 %v2864_v36, %v1251_v25  ;;  %v3051_v22 = vsub.f32 %v2867_v34, %v1250_v29  ;;  %v1393_v38 = vsel %vm385_vm1, %v1313_v30, 0.0  ;;  %v1390_v23 = vsel %vm385_vm1, %v1312_v19, 0.0 }
 0x1b3   : > { %v1211_v41 = vpop.xlane.xlu0 %1210  ;;  %1394 = vadd.xlane.f32.xlu1 %v1393_v38  ;;  %v1214_v5 = vpop.xlane.xlu1 %1213  ;;  %1391 = vadd.xlane.f32.xlu0 %v1390_v23 }
 0x1b4   : > { %v1252_v35 = vmul.f32 0.0625, %v1211_v41  ;;  %v1253_v46 = vmul.f32 0.0625, %v1214_v5  ;;  %v1315_v49 = vmul.f32 %v3048_v16, %v3048_v16  ;;  %v1314_v36 = vmul.f32 %v3051_v22, %v3051_v22 }
 0x1b6   : > { %v3060_v44 = vsub.f32 %v2873_v43, %v1252_v35  ;;  %v3063_v34 = vsub.f32 %v2875_v50, %v1253_v46  ;;  %v1399_v54 = vsel %vm385_vm1, %v1315_v49, 0.0  ;;  %v1396_v40 = vsel %vm385_vm1, %v1314_v36, 0.0 }
 0x1b7   : > { %1400 = vadd.xlane.f32.xlu1 %v1399_v54  ;;  %v1220_v57 = vpop.xlane.xlu1 %1219  ;;  %1397 = vadd.xlane.f32.xlu0 %v1396_v40  ;;  %v1217_v62 = vpop.xlane.xlu0 %1216 }
 0x1b8   : > { %v1255_v12 = vmul.f32 0.0625, %v1220_v57  ;;  %v1254_v53 = vmul.f32 0.0625, %v1217_v62  ;;  %v1317_v6 = vmul.f32 %v3063_v34, %v3063_v34  ;;  %v1316_v43 = vmul.f32 %v3060_v44, %v3060_v44 }
 0x1ba   : > { %v3072_v61 = vsub.f32 %v2881_v48, %v1255_v12  ;;  %v3075_v50 = vsub.f32 %v2883_v63, %v1254_v53  ;;  %v1405_v59 = vsel %vm385_vm1, %v1317_v6, 0.0  ;;  %v1402_v55 = vsel %vm385_vm1, %v1316_v43, 0.0 }
 0x1bb   : > { %1406 = vadd.xlane.f32.xlu1 %v1405_v59  ;;  %1403 = vadd.xlane.f32.xlu0 %v1402_v55  ;;  %v1223_v14 = vpop.xlane.xlu0 %1222 }
 0x1bc   : > { %v1256_v15 = vmul.f32 0.0625, %v1223_v14  ;;  %v1319_v20 = vmul.f32 %v3072_v61, %v3072_v61  ;;  %v1318_v58 = vmul.f32 %v3075_v50, %v3075_v50 }
 0x1be   : > { %v3084_v48 = vsub.f32 %v2889_v7, %v1256_v15  ;;  %v1411_v63 = vsel %vm385_vm1, %v1319_v20, 0.0  ;;  %v1408_v9 = vsel %vm385_vm1, %v1318_v58, 0.0  ;;  %v3094_v20 = vld [vmem:[%s3354_s3] ss:$0 sm:$0xff] }
 0x1bf   : > { %1412 = vadd.xlane.f32.xlu1 %v1411_v63  ;;  %1409 = vadd.xlane.f32.xlu0 %v1408_v9 }
 0x1c0   : > { %v1320_v10 = vmul.f32 %v3084_v48, %v3084_v48 }
 0x1c2   : > { %v1414_v28 = vsel %vm385_vm1, %v1320_v10, 0.0 }
 0x1c3   : > { %1415 = vadd.xlane.f32.xlu0 %v1414_v28 }
 0x20c   : > { %v1323_v8 = vpop.xlane.xlu1 %1322 }
 0x20d   : > { %v1417_v25 = vmul.f32 0.0625, %v1323_v8  ;;  %v3100_v8 = vld [vmem:[%s3355_s4] ss:$0 sm:$0xff] }
 0x20f   : > { %v1449_v29 = vadd.f32 1e-05, %v1417_v25 }
 0x210   : > { %v1329_v30 = vpop.xlane.xlu1 %1328  ;;  %v1326_v19 = vpop.xlane.xlu0 %1325 }
 0x211   : > { %2404 = vrsqrt.f32 %v1449_v29  ;;  %v1419_v7 = vmul.f32 0.0625, %v1329_v30  ;;  %v1418_v38 = vmul.f32 0.0625, %v1326_v19 }
 0x213   : > { %v1451_v23 = vadd.f32 1e-05, %v1419_v7  ;;  %v1450_v41 = vadd.f32 1e-05, %v1418_v38 }
 0x214   : > { %v1335_v5 = vpop.xlane.xlu1 %1334  ;;  %v1332_v35 = vpop.xlane.xlu0 %1331 }
 0x215   : > { %2406 = vrsqrt.f32 %v1451_v23  ;;  %v1421_v46 = vmul.f32 0.0625, %v1335_v5  ;;  %v1420_v49 = vmul.f32 0.0625, %v1332_v35 }
 0x216   : > { %2408 = vrsqrt.f32 %v1450_v41 }
 0x217   : > { %v1453_v36 = vadd.f32 1e-05, %v1421_v46  ;;  %v1452_v54 = vadd.f32 1e-05, %v1420_v49 }
 0x218   : > { %v1341_v40 = vpop.xlane.xlu1 %1340  ;;  %v1338_v57 = vpop.xlane.xlu0 %1337 }
 0x219   : > { %2410 = vrsqrt.f32 %v1453_v36  ;;  %v1423_v62 = vmul.f32 0.0625, %v1341_v40  ;;  %v1422_v12 = vmul.f32 0.0625, %v1338_v57 }
 0x21a   : > { %2412 = vrsqrt.f32 %v1452_v54 }
 0x21b   : > { %v1455_v53 = vadd.f32 1e-05, %v1423_v62  ;;  %v1454_v6 = vadd.f32 1e-05, %v1422_v12 }
 0x21c   : > { %v1347_v43 = vpop.xlane.xlu1 %1346  ;;  %v1344_v59 = vpop.xlane.xlu0 %1343 }
 0x21d   : > { %2414 = vrsqrt.f32 %v1455_v53  ;;  %v1425_v55 = vmul.f32 0.0625, %v1347_v43  ;;  %v1424_v14 = vmul.f32 0.0625, %v1344_v59 }
 0x21e   : > { %v2405_v15 = vpop.eup %2404  ;;  %2416 = vrsqrt.f32 %v1454_v6 }
 0x21f   : > { %v1457_v58 = vadd.f32 1e-05, %v1425_v55  ;;  %v1456_v63 = vadd.f32 1e-05, %v1424_v14  ;;  %v1513_v9 = vmul.f32 %v2405_v15, %v2894_v13 }
 0x220   : > { %v1353_v10 = vpop.xlane.xlu1 %1352  ;;  %v1350_v28 = vpop.xlane.xlu0 %1349 }
 0x221   : > { %2418 = vrsqrt.f32 %v1457_v58  ;;  %v1427_v25 = vmul.f32 0.0625, %v1353_v10  ;;  %v1426_v29 = vmul.f32 0.0625, %v1350_v28  ;;  %v1552_v30 = vmul.f32 %v3094_v20, %v1513_v9 }
 0x222   : > { %v2407_v19 = vpop.eup %2406  ;;  %2420 = vrsqrt.f32 %v1456_v63 }
 0x223   : > { %v2409_v7 = vpop.eup %2408  ;;  %v1459_v38 = vadd.f32 1e-05, %v1427_v25  ;;  %v1458_v23 = vadd.f32 1e-05, %v1426_v29  ;;  %v1591_v41 = vadd.f32 %v3100_v8, %v1552_v30  ;;  %v1515_v13 = vmul.f32 %v2407_v19, %v2899_v4 }
 0x224   : > { %v1359_v5 = vpop.xlane.xlu1 %1358  ;;  %v1356_v35 = vpop.xlane.xlu0 %1355  ;;  %v1514_v46 = vmul.f32 %v2409_v7, %v2902_v21 }
 0x225   : > { %2422 = vrsqrt.f32 %v1459_v38  ;;  %v1429_v49 = vmul.f32 0.0625, %v1359_v5  ;;  %v1428_v36 = vmul.f32 0.0625, %v1356_v35  ;;  %2292 = vmatprep.mubr.msk.f32.mxu1 %vm385_vm1, %v1591_v41  ;;  %v1554_v54 = vmul.f32 %v3094_v20, %v1515_v13 }
 0x226   : > { %v2411_v40 = vpop.eup %2410  ;;  %2424 = vrsqrt.f32 %v1458_v23  ;;  %v1553_v57 = vmul.f32 %v3094_v20, %v1514_v46 }
 0x227   : > { %v2413_v62 = vpop.eup %2412  ;;  %v1461_v12 = vadd.f32 1e-05, %v1429_v49  ;;  %v1460_v53 = vadd.f32 1e-05, %v1428_v36  ;;  %v1593_v4 = vadd.f32 %v3100_v8, %v1554_v54  ;;  %v1517_v6 = vmul.f32 %v2411_v40, %v2913_v31 }
 0x228   : > { %v1365_v43 = vpop.xlane.xlu1 %1364  ;;  %v1362_v21 = vpop.xlane.xlu0 %1361  ;;  %v1592_v59 = vadd.f32 %v3100_v8, %v1553_v57  ;;  %v1516_v55 = vmul.f32 %v2413_v62, %v2910_v37 }
 0x229   : > { %2426 = vrsqrt.f32 %v1461_v12  ;;  %v1431_v14 = vmul.f32 0.0625, %v1365_v43  ;;  %v1430_v15 = vmul.f32 0.0625, %v1362_v21  ;;  %v1556_v58 = vmul.f32 %v3094_v20, %v1517_v6 }
 0x22a   : > { %v2415_v63 = vpop.eup %2414  ;;  %2428 = vrsqrt.f32 %v1460_v53  ;;  %2293 = vmatmul.mubr.msk.f32.vlgmr.msra.gmra.mxu1 %vm385_vm1, %v1592_v59  ;;  %v1555_v9 = vmul.f32 %v3094_v20, %v1516_v55 }
 0x22b   : > { %v2417_v10 = vpop.eup %2416  ;;  %v1463_v28 = vadd.f32 1e-05, %v1431_v14  ;;  %v1462_v31 = vadd.f32 1e-05, %v1430_v15  ;;  %2295 = vmatprep.mubr.msk.f32.mxu1 %vm385_vm1, %v1593_v4  ;;  %v1595_v25 = vadd.f32 %v3100_v8, %v1556_v58  ;;  %v1519_v37 = vmul.f32 %v2415_v63, %v2922_v26 }
 0x22c   : > { %v1371_v29 = vpop.xlane.xlu1 %1370  ;;  %v1368_v30 = vpop.xlane.xlu0 %1367  ;;  %v1594_v19 = vadd.f32 %v3100_v8, %v1555_v9  ;;  %v1518_v7 = vmul.f32 %v2417_v10, %v2925_v51 }
 0x22d   : > { %2430 = vrsqrt.f32 %v1463_v28  ;;  %v1433_v38 = vmul.f32 0.0625, %v1371_v29  ;;  %v1432_v23 = vmul.f32 0.0625, %v1368_v30  ;;  %v1558_v41 = vmul.f32 %v3094_v20, %v1519_v37 }
 0x22e   : > { %v2419_v13 = vpop.eup %2418  ;;  %2432 = vrsqrt.f32 %v1462_v31  ;;  %2296 = vmatmul.mubr.msk.f32.gmra.mxu1 %vm385_vm1, %v1594_v19  ;;  %v1557_v5 = vmul.f32 %v3094_v20, %v1518_v7 }
 0x22f   : > { %v2421_v35 = vpop.eup %2420  ;;  %v1465_v46 = vadd.f32 1e-05, %v1433_v38  ;;  %v1464_v26 = vadd.f32 1e-05, %v1432_v23  ;;  %2298 = vmatprep.mubr.msk.f32.mxu1 %vm385_vm1, %v1595_v25  ;;  %v1597_v49 = vadd.f32 %v3100_v8, %v1558_v41  ;;  %v1521_v51 = vmul.f32 %v2419_v13, %v2937_v3 }
 0x230   : > { %v1377_v36 = vpop.xlane.xlu1 %1376  ;;  %v1374_v54 = vpop.xlane.xlu0 %1373  ;;  %v1596_v40 = vadd.f32 %v3100_v8, %v1557_v5  ;;  %v1520_v57 = vmul.f32 %v2421_v35, %v2934_v60 }
 0x231   : > { %2434 = vrsqrt.f32 %v1465_v46  ;;  %v1435_v62 = vmul.f32 0.0625, %v1377_v36  ;;  %v1434_v12 = vmul.f32 0.0625, %v1374_v54  ;;  %v1560_v53 = vmul.f32 %v3094_v20, %v1521_v51 }
 0x232   : > { %v2423_v4 = vpop.eup %2422  ;;  %2436 = vrsqrt.f32 %v1464_v26  ;;  %2299 = vmatmul.mubr.msk.f32.gmra.mxu1 %vm385_vm1, %v1596_v40  ;;  %v1559_v6 = vmul.f32 %v3094_v20, %v1520_v57 }
 0x233   : > { %v2425_v43 = vpop.eup %2424  ;;  %v1467_v21 = vadd.f32 1e-05, %v1435_v62  ;;  %v1466_v3 = vadd.f32 1e-05, %v1434_v12  ;;  %2301 = vmatprep.mubr.msk.f32.mxu1 %vm385_vm1, %v1597_v49  ;;  %v1599_v59 = vadd.f32 %v3100_v8, %v1560_v53  ;;  %v1523_v60 = vmul.f32 %v2423_v4, %v2946_v27 }
 0x234   : > { %v1383_v55 = vpop.xlane.xlu1 %1382  ;;  %v1380_v14 = vpop.xlane.xlu0 %1379  ;;  %v1598_v15 = vadd.f32 %v3100_v8, %v1559_v6  ;;  %v1522_v58 = vmul.f32 %v2425_v43, %v2949_v18 }
 0x235   : > { %2438 = vrsqrt.f32 %v1467_v21  ;;  %v1437_v63 = vmul.f32 0.0625, %v1383_v55  ;;  %v1436_v9 = vmul.f32 0.0625, %v1380_v14  ;;  %v1562_v10 = vmul.f32 %v3094_v20, %v1523_v60 }
 0x236   : > { %v2427_v28 = vpop.eup %2426  ;;  %2440 = vrsqrt.f32 %v1466_v3  ;;  %2302 = vmatmul.mubr.msk.f32.gmra.mxu1 %vm385_vm1, %v1598_v15  ;;  %v1561_v31 = vmul.f32 %v3094_v20, %v1522_v58 }
 0x237   : > { %v2429_v25 = vpop.eup %2428  ;;  %v1469_v37 = vadd.f32 1e-05, %v1437_v63  ;;  %v1468_v27 = vadd.f32 1e-05, %v1436_v9  ;;  %2304 = vmatprep.mubr.msk.f32.mxu1 %vm385_vm1, %v1599_v59  ;;  %v1601_v29 = vadd.f32 %v3100_v8, %v1562_v10  ;;  %v1525_v18 = vmul.f32 %v2427_v28, %v2961_v33 }
 0x238   : > { %v1389_v30 = vpop.xlane.xlu1 %1388  ;;  %v1386_v19 = vpop.xlane.xlu0 %1385  ;;  %v1600_v7 = vadd.f32 %v3100_v8, %v1561_v31  ;;  %v1524_v38 = vmul.f32 %v2429_v25, %v2958_v39 }
 0x239   : > { %2442 = vrsqrt.f32 %v1469_v37  ;;  %v1439_v23 = vmul.f32 0.0625, %v1389_v30  ;;  %v1438_v41 = vmul.f32 0.0625, %v1386_v19  ;;  %v1564_v13 = vmul.f32 %v3094_v20, %v1525_v18 }
 0x23a   : > { %v2431_v5 = vpop.eup %2430  ;;  %2444 = vrsqrt.f32 %v1468_v27  ;;  %2305 = vmatmul.mubr.msk.f32.gmra.mxu1 %vm385_vm1, %v1600_v7  ;;  %v1563_v35 = vmul.f32 %v3094_v20, %v1524_v38 }
 0x23b   : > { %v2433_v46 = vpop.eup %2432  ;;  %v1471_v26 = vadd.f32 1e-05, %v1439_v23  ;;  %v1470_v33 = vadd.f32 1e-05, %v1438_v41  ;;  %2307 = vmatprep.mubr.msk.f32.mxu1 %vm385_vm1, %v1601_v29  ;;  %v1603_v49 = vadd.f32 %v3100_v8, %v1564_v13  ;;  %v1527_v39 = vmul.f32 %v2431_v5, %v2970_v32 }
 0x23c   : > { %v1395_v51 = vpop.xlane.xlu1 %1394  ;;  %v1392_v36 = vpop.xlane.xlu0 %1391  ;;  %v1602_v54 = vadd.f32 %v3100_v8, %v1563_v35  ;;  %v1526_v40 = vmul.f32 %v2433_v46, %v2973_v47 }
 0x23d   : > { %2446 = vrsqrt.f32 %v1471_v26  ;;  %v1441_v57 = vmul.f32 0.0625, %v1395_v51  ;;  %v1440_v62 = vmul.f32 0.0625, %v1392_v36  ;;  %v1566_v12 = vmul.f32 %v3094_v20, %v1527_v39 }
 0x23e   : > { %v2435_v53 = vpop.eup %2434  ;;  %2448 = vrsqrt.f32 %v1470_v33  ;;  %2308 = vmatmul.mubr.msk.f32.gmra.mxu1 %vm385_vm1, %v1602_v54  ;;  %v1565_v4 = vmul.f32 %v3094_v20, %v1526_v40 }
 0x23f   : > { %v2437_v6 = vpop.eup %2436  ;;  %v1473_v43 = vadd.f32 1e-05, %v1441_v57  ;;  %v1472_v32 = vadd.f32 1e-05, %v1440_v62  ;;  %2310 = vmatprep.mubr.msk.f32.mxu1 %vm385_vm1, %v1603_v49  ;;  %v1605_v21 = vadd.f32 %v3100_v8, %v1566_v12  ;;  %v1529_v47 = vmul.f32 %v2435_v53, %v2985_v0 }
 0x240   : > { %v1401_v3 = vpop.xlane.xlu1 %1400  ;;  %v1398_v59 = vpop.xlane.xlu0 %1397  ;;  %v1604_v60 = vadd.f32 %v3100_v8, %v1565_v4  ;;  %v1528_v55 = vmul.f32 %v2437_v6, %v2982_v45 }
 0x241   : > { %2450 = vrsqrt.f32 %v1473_v43  ;;  %v1443_v14 = vmul.f32 0.0625, %v1401_v3  ;;  %v1442_v15 = vmul.f32 0.0625, %v1398_v59  ;;  %v1568_v58 = vmul.f32 %v3094_v20, %v1529_v47 }
 0x242   : > { %v2439_v63 = vpop.eup %2438  ;;  %2452 = vrsqrt.f32 %v1472_v32  ;;  %2311 = vmatmul.mubr.msk.f32.gmra.mxu1 %vm385_vm1, %v1604_v60  ;;  %v1567_v9 = vmul.f32 %v3094_v20, %v1528_v55 }
 0x243   : > { %v2441_v10 = vpop.eup %2440  ;;  %v1475_v28 = vadd.f32 1e-05, %v1443_v14  ;;  %v1474_v0 = vadd.f32 1e-05, %v1442_v15  ;;  %2313 = vmatprep.mubr.msk.f32.mxu1 %vm385_vm1, %v1605_v21  ;;  %v1607_v31 = vadd.f32 %v3100_v8, %v1568_v58  ;;  %v1531_v45 = vmul.f32 %v2439_v63, %v2994_v11 }
 0x244   : > { %v1407_v25 = vpop.xlane.xlu1 %1406  ;;  %v1404_v37 = vpop.xlane.xlu0 %1403  ;;  %v1606_v27 = vadd.f32 %v3100_v8, %v1567_v9  ;;  %v1530_v29 = vmul.f32 %v2441_v10, %v2997_v17 }
 0x245   : > { %2454 = vrsqrt.f32 %v1475_v28  ;;  %v1445_v18 = vmul.f32 0.0625, %v1407_v25  ;;  %v1444_v30 = vmul.f32 0.0625, %v1404_v37  ;;  %v1570_v19 = vmul.f32 %v3094_v20, %v1531_v45 }
 0x246   : > { %v2443_v7 = vpop.eup %2442  ;;  %2456 = vrsqrt.f32 %v1474_v0  ;;  %2314 = vmatmul.mubr.msk.f32.gmra.mxu1 %vm385_vm1, %v1606_v27  ;;  %v1569_v38 = vmul.f32 %v3094_v20, %v1530_v29 }
 0x247   : > { %v2445_v23 = vpop.eup %2444  ;;  %v1477_v41 = vadd.f32 1e-05, %v1445_v18  ;;  %v1476_v11 = vadd.f32 1e-05, %v1444_v30  ;;  %2316 = vmatprep.mubr.msk.f32.mxu1 %vm385_vm1, %v1607_v31  ;;  %v1609_v13 = vadd.f32 %v3100_v8, %v1570_v19  ;;  %v1533_v17 = vmul.f32 %v2443_v7, %v3012_v24 }
 0x248   : > { %v1413_v5 = vpop.xlane.xlu1 %1412  ;;  %v1410_v35 = vpop.xlane.xlu0 %1409  ;;  %v1608_v46 = vadd.f32 %v3100_v8, %v1569_v38  ;;  %v1532_v26 = vmul.f32 %v2445_v23, %v3009_v42 }
 0x249   : > { %2458 = vrsqrt.f32 %v1477_v41  ;;  %v1447_v33 = vmul.f32 0.0625, %v1413_v5  ;;  %v1446_v49 = vmul.f32 0.0625, %v1410_v35  ;;  %v1572_v39 = vmul.f32 %v3094_v20, %v1533_v17 }
 0x24a   : > { %v2447_v51 = vpop.eup %2446  ;;  %2460 = vrsqrt.f32 %v1476_v11  ;;  %2317 = vmatmul.mubr.msk.f32.gmra.mxu1 %vm385_vm1, %v1608_v46  ;;  %v1571_v36 = vmul.f32 %v3094_v20, %v1532_v26 }
 0x24b   : > { %v2449_v54 = vpop.eup %2448  ;;  %v1479_v40 = vadd.f32 1e-05, %v1447_v33  ;;  %v1478_v24 = vadd.f32 1e-05, %v1446_v49  ;;  %2319 = vmatprep.mubr.msk.f32.mxu1 %vm385_vm1, %v1609_v13  ;;  %v1611_v57 = vadd.f32 %v3100_v8, %v1572_v39  ;;  %v1535_v42 = vmul.f32 %v2447_v51, %v3024_v2  ;;  %v3233_v13 = vld [vmem:[%s3357_s6] ss:$0 sm:$0xff] }
 0x24c   : > { %v1416_v62 = vpop.xlane.xlu0 %1415  ;;  %v1610_v12 = vadd.f32 %v3100_v8, %v1571_v36  ;;  %v1534_v53 = vmul.f32 %v2449_v54, %v3027_v56 }
 0x24d   : > { %2462 = vrsqrt.f32 %v1479_v40  ;;  %v1448_v4 = vmul.f32 0.0625, %v1416_v62  ;;  %v1574_v6 = vmul.f32 %v3094_v20, %v1535_v42 }
 0x24e   : > { %v2451_v43 = vpop.eup %2450  ;;  %2464 = vrsqrt.f32 %v1478_v24  ;;  %2320 = vmatmul.mubr.msk.f32.gmra.mxu1 %vm385_vm1, %v1610_v12  ;;  %v1573_v32 = vmul.f32 %v3094_v20, %v1534_v53 }
 0x24f   : > { %v2453_v21 = vpop.eup %2452  ;;  %v1480_v47 = vadd.f32 1e-05, %v1448_v4  ;;  %2322 = vmatprep.mubr.msk.f32.mxu1 %vm385_vm1, %v1611_v57  ;;  %v1613_v2 = vadd.f32 %v3100_v8, %v1574_v6  ;;  %v1537_v3 = vmul.f32 %v2451_v43, %v3039_v1 }
 0x250   : > { %v1612_v56 = vadd.f32 %v3100_v8, %v1573_v32  ;;  %v1536_v59 = vmul.f32 %v2453_v21, %v3036_v52 }
 0x251   : > { %2466 = vrsqrt.f32 %v1480_v47  ;;  %v1576_v60 = vmul.f32 %v3094_v20, %v1537_v3 }
 0x252   : > { %v2455_v55 = vpop.eup %2454  ;;  %2323 = vmatmul.mubr.msk.f32.gmra.mxu1 %vm385_vm1, %v1612_v56  ;;  %v1575_v14 = vmul.f32 %v3094_v20, %v1536_v59 }
 0x253   : > { %v2457_v15 = vpop.eup %2456  ;;  %2325 = vmatprep.mubr.msk.f32.mxu1 %vm385_vm1, %v1613_v2  ;;  %v1615_v58 = vadd.f32 %v3100_v8, %v1576_v60  ;;  %v1539_v63 = vmul.f32 %v2455_v55, %v3048_v16 }
 0x254   : > { %v1614_v1 = vadd.f32 %v3100_v8, %v1575_v14  ;;  %v1538_v9 = vmul.f32 %v2457_v15, %v3051_v22 }
 0x255   : > { %v1578_v52 = vmul.f32 %v3094_v20, %v1539_v63 }
 0x256   : > { %v2459_v10 = vpop.eup %2458  ;;  %2326 = vmatmul.mubr.msk.f32.gmra.mxu1 %vm385_vm1, %v1614_v1  ;;  %v1577_v28 = vmul.f32 %v3094_v20, %v1538_v9 }
 0x257   : > { %v2461_v0 = vpop.eup %2460  ;;  %2328 = vmatprep.mubr.msk.f32.mxu1 %vm385_vm1, %v1615_v58  ;;  %v1617_v31 = vadd.f32 %v3100_v8, %v1578_v52  ;;  %v1541_v45 = vmul.f32 %v2459_v10, %v3063_v34 }
 0x258   : > { %v1616_v16 = vadd.f32 %v3100_v8, %v1577_v28  ;;  %v1540_v25 = vmul.f32 %v2461_v0, %v3060_v44 }
 0x259   : > { %v1580_v22 = vmul.f32 %v3094_v20, %v1541_v45 }
 0x25a   : > { %v2463_v37 = vpop.eup %2462  ;;  %2329 = vmatmul.mubr.msk.f32.gmra.mxu1 %vm385_vm1, %v1616_v16  ;;  %v1579_v27 = vmul.f32 %v3094_v20, %v1540_v25 }
 0x25b   : > { %v2465_v29 = vpop.eup %2464  ;;  %2331 = vmatprep.mubr.msk.f32.mxu1 %vm385_vm1, %v1617_v31  ;;  %v1619_v18 = vadd.f32 %v3100_v8, %v1580_v22  ;;  %v1543_v30 = vmul.f32 %v2463_v37, %v3072_v61 }
 0x25c   : > { %v1618_v34 = vadd.f32 %v3100_v8, %v1579_v27  ;;  %v1542_v19 = vmul.f32 %v2465_v29, %v3075_v50 }
 0x25d   : > { %v1582_v44 = vmul.f32 %v3094_v20, %v1543_v30 }
 0x25e   : > { %v2467_v7 = vpop.eup %2466  ;;  %2332 = vmatmul.mubr.msk.f32.gmra.mxu1 %vm385_vm1, %v1618_v34  ;;  %v1581_v38 = vmul.f32 %v3094_v20, %v1542_v19 }
 0x25f   : > { %2334 = vmatprep.mubr.msk.f32.mxu1 %vm385_vm1, %v1619_v18  ;;  %v1621_v23 = vadd.f32 %v3100_v8, %v1582_v44  ;;  %v1544_v41 = vmul.f32 %v2467_v7, %v3084_v48 }
 0x260   : > { %v1620_v61 = vadd.f32 %v3100_v8, %v1581_v38 }
 0x261   : > { %v1583_v11 = vmul.f32 %v3094_v20, %v1544_v41 }
 0x262   : > { %2335 = vmatmul.mubr.msk.f32.gmra.mxu1 %vm385_vm1, %v1620_v61 }
 0x263   : > { %2337 = vmatprep.mubr.msk.f32.mxu1 %vm385_vm1, %v1621_v23  ;;  %v1622_v50 = vadd.f32 %v3100_v8, %v1583_v11 }
 0x266   : > { %2338 = vmatmul.mubr.msk.f32.gmra.mxu1 %vm385_vm1, %v1622_v50 }
 0x2ea   : > { %v2294_v48 = vpop.f32.mrf.mxu1 }
 0x2eb   : > { %v1800_v20 = vadd.f32 %v2294_v48, %v3233_v13 }
 0x2ec   : > { %v1794_v8 = vpop.f32.mrf.mxu1 }
 0x2ed   : > { %1955 = vst.msk [vmem:[%s3238_s19 + $0x8] sm:$0xff] %vm1953_vm2, %v1800_v20  ;;  %v1795_v17 = vadd.f32 %v3233_v13, %v1794_v8 }
 0x2ee   : > { %v2297_v5 = vpop.f32.mrf.mxu1 }
 0x2ef   : > { %1954 = vst.msk [vmem:[%s3238_s19] sm:$0xff] %vm1953_vm2, %v1795_v17  ;;  %v1810_v35 = vadd.f32 %v2297_v5, %v3233_v13 }
 0x2f0   : > { %v1804_v46 = vpop.f32.mrf.mxu1 }
 0x2f1   : > { %1957 = vst.msk [vmem:[%s3238_s19 + $0x18] sm:$0xff] %vm1953_vm2, %v1810_v35  ;;  %v1805_v26 = vadd.f32 %v3233_v13, %v1804_v46 }
 0x2f2   : > { %v2300_v33 = vpop.f32.mrf.mxu1 }
 0x2f3   : > { %1956 = vst.msk [vmem:[%s3238_s19 + $0x10] sm:$0xff] %vm1953_vm2, %v1805_v26  ;;  %v1820_v49 = vadd.f32 %v2300_v33, %v3233_v13 }
 0x2f4   : > { %v1814_v39 = vpop.f32.mrf.mxu1 }
 0x2f5   : > { %1959 = vst.msk [vmem:[%s3238_s19 + $0x28] sm:$0xff] %vm1953_vm2, %v1820_v49  ;;  %v1815_v51 = vadd.f32 %v3233_v13, %v1814_v39 }
 0x2f6   : > { %v2303_v36 = vpop.f32.mrf.mxu1 }
 0x2f7   : > { %1958 = vst.msk [vmem:[%s3238_s19 + $0x20] sm:$0xff] %vm1953_vm2, %v1815_v51  ;;  %v1830_v54 = vadd.f32 %v2303_v36, %v3233_v13 }
 0x2f8   : > { %v1824_v40 = vpop.f32.mrf.mxu1 }
 0x2f9   : > { %1961 = vst.msk [vmem:[%s3238_s19 + $0x38] sm:$0xff] %vm1953_vm2, %v1830_v54  ;;  %v1825_v24 = vadd.f32 %v3233_v13, %v1824_v40 }
 0x2fa   : > { %v2306_v57 = vpop.f32.mrf.mxu1 }
 0x2fb   : > { %1960 = vst.msk [vmem:[%s3238_s19 + $0x30] sm:$0xff] %vm1953_vm2, %v1825_v24  ;;  %v1840_v42 = vadd.f32 %v2306_v57, %v3233_v13 }
 0x2fc   : > { %v1834_v62 = vpop.f32.mrf.mxu1 }
 0x2fd   : > { %1963 = vst.msk [vmem:[%s3238_s19 + $0x48] sm:$0xff] %vm1953_vm2, %v1840_v42  ;;  %v1835_v12 = vadd.f32 %v3233_v13, %v1834_v62 }
 0x2fe   : > { %v2309_v53 = vpop.f32.mrf.mxu1 }
 0x2ff   : > { %1962 = vst.msk [vmem:[%s3238_s19 + $0x40] sm:$0xff] %vm1953_vm2, %v1835_v12  ;;  %v1850_v4 = vadd.f32 %v2309_v53, %v3233_v13 }
 0x300   : > { %v1844_v6 = vpop.f32.mrf.mxu1 }
 0x301   : > { %1965 = vst.msk [vmem:[%s3238_s19 + $0x58] sm:$0xff] %vm1953_vm2, %v1850_v4  ;;  %v1845_v43 = vadd.f32 %v3233_v13, %v1844_v6 }
 0x302   : > { %v2312_v32 = vpop.f32.mrf.mxu1 }
 0x303   : > { %1964 = vst.msk [vmem:[%s3238_s19 + $0x50] sm:$0xff] %vm1953_vm2, %v1845_v43  ;;  %v1860_v21 = vadd.f32 %v2312_v32, %v3233_v13 }
 0x304   : > { %v1854_v47 = vpop.f32.mrf.mxu1 }
 0x305   : > { %1967 = vst.msk [vmem:[%s3238_s19 + $0x68] sm:$0xff] %vm1953_vm2, %v1860_v21  ;;  %v1855_v2 = vadd.f32 %v3233_v13, %v1854_v47 }
 0x306   : > { %v2315_v3 = vpop.f32.mrf.mxu1 }
 0x307   : > { %1966 = vst.msk [vmem:[%s3238_s19 + $0x60] sm:$0xff] %vm1953_vm2, %v1855_v2  ;;  %v1870_v56 = vadd.f32 %v2315_v3, %v3233_v13 }
 0x308   : > { %v1864_v59 = vpop.f32.mrf.mxu1 }
 0x309   : > { %1969 = vst.msk [vmem:[%s3238_s19 + $0x78] sm:$0xff] %vm1953_vm2, %v1870_v56  ;;  %v1865_v60 = vadd.f32 %v3233_v13, %v1864_v59 }
 0x30a   : > { %v2318_v55 = vpop.f32.mrf.mxu1 }
 0x30b   : > { %1968 = vst.msk [vmem:[%s3238_s19 + $0x70] sm:$0xff] %vm1953_vm2, %v1865_v60  ;;  %v1880_v14 = vadd.f32 %v2318_v55, %v3233_v13 }
 0x30c   : > { %v1874_v15 = vpop.f32.mrf.mxu1 }
 0x30d   : > { %1971 = vst.msk [vmem:[%s3238_s19 + $0x88] sm:$0xff] %vm1953_vm2, %v1880_v14  ;;  %v1875_v58 = vadd.f32 %v3233_v13, %v1874_v15 }
 0x30e   : > { %v2321_v63 = vpop.f32.mrf.mxu1 }
 0x30f   : > { %1970 = vst.msk [vmem:[%s3238_s19 + $0x80] sm:$0xff] %vm1953_vm2, %v1875_v58  ;;  %v1890_v1 = vadd.f32 %v2321_v63, %v3233_v13 }
 0x310   : > { %v1884_v9 = vpop.f32.mrf.mxu1 }
 0x311   : > { %1973 = vst.msk [vmem:[%s3238_s19 + $0x98] sm:$0xff] %vm1953_vm2, %v1890_v1  ;;  %v1885_v52 = vadd.f32 %v3233_v13, %v1884_v9 }
 0x312   : > { %v2324_v10 = vpop.f32.mrf.mxu1 }
 0x313   : > { %1972 = vst.msk [vmem:[%s3238_s19 + $0x90] sm:$0xff] %vm1953_vm2, %v1885_v52  ;;  %v1900_v28 = vadd.f32 %v2324_v10, %v3233_v13 }
 0x314   : > { %v1894_v0 = vpop.f32.mrf.mxu1 }
 0x315   : > { %1975 = vst.msk [vmem:[%s3238_s19 + $0xa8] sm:$0xff] %vm1953_vm2, %v1900_v28  ;;  %v1895_v31 = vadd.f32 %v3233_v13, %v1894_v0 }
 0x316   : > { %v2327_v45 = vpop.f32.mrf.mxu1 }
 0x317   : > { %1974 = vst.msk [vmem:[%s3238_s19 + $0xa0] sm:$0xff] %vm1953_vm2, %v1895_v31  ;;  %v1910_v16 = vadd.f32 %v2327_v45, %v3233_v13 }
 0x318   : > { %v1904_v25 = vpop.f32.mrf.mxu1 }
 0x319   : > { %1977 = vst.msk [vmem:[%s3238_s19 + $0xb8] sm:$0xff] %vm1953_vm2, %v1910_v16  ;;  %v1905_v22 = vadd.f32 %v3233_v13, %v1904_v25 }
 0x31a   : > { %v2330_v37 = vpop.f32.mrf.mxu1 }
 0x31b   : > { %1976 = vst.msk [vmem:[%s3238_s19 + $0xb0] sm:$0xff] %vm1953_vm2, %v1905_v22  ;;  %v1920_v27 = vadd.f32 %v2330_v37, %v3233_v13 }
 0x31c   : > { %v1914_v29 = vpop.f32.mrf.mxu1 }
 0x31d   : > { %1979 = vst.msk [vmem:[%s3238_s19 + $0xc8] sm:$0xff] %vm1953_vm2, %v1920_v27  ;;  %v1915_v18 = vadd.f32 %v3233_v13, %v1914_v29 }
 0x31e   : > { %v2333_v30 = vpop.f32.mrf.mxu1 }
 0x31f   : > { %1978 = vst.msk [vmem:[%s3238_s19 + $0xc0] sm:$0xff] %vm1953_vm2, %v1915_v18  ;;  %v1930_v34 = vadd.f32 %v2333_v30, %v3233_v13 }
 0x320   : > { %v1924_v19 = vpop.f32.mrf.mxu1 }
 0x321   : > { %1981 = vst.msk [vmem:[%s3238_s19 + $0xd8] sm:$0xff] %vm1953_vm2, %v1930_v34  ;;  %v1925_v44 = vadd.f32 %v3233_v13, %v1924_v19 }
 0x322   : > { %v2336_v7 = vpop.f32.mrf.mxu1 }
 0x323   : > { %1980 = vst.msk [vmem:[%s3238_s19 + $0xd0] sm:$0xff] %vm1953_vm2, %v1925_v44  ;;  %v1940_v38 = vadd.f32 %v2336_v7, %v3233_v13 }
 0x324   : > { %v1934_v23 = vpop.f32.mrf.mxu1 }
 0x325   : > { %1983 = vst.msk [vmem:[%s3238_s19 + $0xe8] sm:$0xff] %vm1953_vm2, %v1940_v38  ;;  %v1935_v41 = vadd.f32 %v3233_v13, %v1934_v23 }
 0x326   : > { %v2339_v61 = vpop.f32.mrf.mxu1 }
 0x327   : > { %1982 = vst.msk [vmem:[%s3238_s19 + $0xe0] sm:$0xff] %vm1953_vm2, %v1935_v41  ;;  %v1950_v11 = vadd.f32 %v2339_v61, %v3233_v13 }
 0x328   : > { %v1944_v50 = vpop.f32.mrf.mxu1 }
 0x329   : > { %1985 = vst.msk [vmem:[%s3238_s19 + $0xf8] sm:$0xff] %vm1953_vm2, %v1950_v11  ;;  %v1945_v48 = vadd.f32 %v3233_v13, %v1944_v50 }
 0x32b   : > { %1984 = vst.msk [vmem:[%s3238_s19 + $0xf0] sm:$0xff] %vm1953_vm2, %v1945_v48 }
 0x32c PF: > { %s17_s28 = sadd.s32 1, %s2506_s28   ;;  %s3359_s24 = smov %s2498_s26 }
 0x32d   : > { %p14_p7 = scmp.ge.s32.totalorder %s17_s28, 6   ;;  %s3360_s25 = smov %s2502_s27 }
 0x32e   : > { %s3361_s26 = smov %s3364_s29  ;;  %s3362_s27 = smov %s3368_s30 }
 0x32f   :  { %16 = sbr.rel (!%p14_p7) target bundleno = 3 (0x3), region = 92 }

</bundles_post_ra>
